<compile_context>
chip_gen: v5e
topology: v5e:2x2
jax: 0.10.0
libtpu: 0.0.40
codegen_flags: <defaults>
</compile_context>

<pallas_src>
import functools

import jax
import jax.numpy as jnp
from jax import lax
from jax.experimental import pallas as pl
from jax.experimental.pallas import tpu as pltpu


# ----------------------------------------------------------------------------
# Fused kernel: [1x1 conv + BN + ReLU] -> [ConvTranspose 3x3 s2 + BN + ReLU]
#               -> [1x1 conv + BN + ReLU], one row-tile per grid step.
# ----------------------------------------------------------------------------
def _decoder_block_kernel(*refs, H, split):
    if split:
        (xm_ref, xh_ref, w1_ref, b1_ref, w2a_ref, w2b_ref, b2_ref,
         w3_ref, b3_ref, o_ref, y1_sc) = refs
    else:
        (xm_ref, xh_ref, w1_ref, b1_ref, w2_ref, b2_ref,
         w3_ref, b3_ref, o_ref, y1_sc) = refs

    TH = xm_ref.shape[1]
    W = xm_ref.shape[2]
    Cin = xm_ref.shape[3]
    C4 = w1_ref.shape[1]
    Cout4 = o_ref.shape[3]

    # --- stage 1: 1x1 conv (+ folded BN) + ReLU -------------------------------
    # Main tile and 1-row halo as two separate dots into a shared VMEM scratch
    # (avoids the Cin-wide concat copy of the previous version).
    y1m = jnp.dot(xm_ref[...].reshape(TH * W, Cin), w1_ref[...],
                  preferred_element_type=jnp.float32)
    y1m = jnp.maximum(y1m + b1_ref[...], 0.0)
    y1_sc[pl.ds(0, TH), :, :] = y1m.reshape(TH, W, C4)

    y1h = jnp.dot(xh_ref[...].reshape(W, Cin), w1_ref[...],
                  preferred_element_type=jnp.float32)
    y1h = jnp.maximum(y1h + b1_ref[...], 0.0)
    y1_sc[pl.ds(TH, 1), :, :] = y1h.reshape(1, W, C4)

    # The deconv's virtual zero padding: only the first row past the real image
    # (global row == H) can influence a kept output row, so zero just that one
    # scratch row, and only on the tile whose window contains it.
    zero_row = H - pl.program_id(1) * TH

    @pl.when(zero_row <= TH)
    def _():
        y1_sc[pl.ds(zero_row, 1), :, :] = jnp.zeros((1, W, C4), jnp.float32)

    y1 = y1_sc[...]                                     # (TH+1, W, C4) f32
    # n+1 column taps: one-column left shift with a zero-filled right edge
    # (this *is* the deconv's right zero padding, so no extra mask is needed).
    y1r = jnp.concatenate(
        [y1[:, 1:, :], jnp.zeros((TH + 1, 1, C4), jnp.float32)], axis=1)

    # --- stage 2: ConvTranspose2d(3, s=2, p=1, op=1) as 4 output-parity phases
    t_a = y1[:TH]        # y1[m,   n  ]
    t_b = y1r[:TH]       # y1[m,   n+1]
    t_c = y1[1:]         # y1[m+1, n  ]
    t_d = y1r[1:]        # y1[m+1, n+1]
    x4 = jnp.concatenate([t_a, t_b, t_c, t_d],
                         axis=-1).astype(jnp.bfloat16).reshape(TH * W, 4 * C4)
    if split:
        k2 = w2a_ref.shape[0]                           # 2*C4
        z_even = jnp.dot(x4[:, :k2], w2a_ref[...],
                         preferred_element_type=jnp.float32)
        z_odd = jnp.dot(x4, w2b_ref[...], preferred_element_type=jnp.float32)
        z = jnp.concatenate([z_even, z_odd], axis=-1)
    else:
        z = jnp.dot(x4, w2_ref[...], preferred_element_type=jnp.float32)
    z = jnp.maximum(z + b2_ref[...], 0.0).astype(jnp.bfloat16)

    # --- stage 3: 1x1 conv (block-diagonal over the 4 phases) + BN + ReLU ----
    y3 = jnp.dot(z, w3_ref[...], preferred_element_type=jnp.float32)
    y3 = jnp.maximum(y3 + b3_ref[...], 0.0)
    o_ref[...] = y3.reshape(1, TH, W, Cout4).astype(o_ref.dtype)


# ----------------------------------------------------------------------------
# Generation-aware VMEM budgets + row-tile selection (divisibility-free).
# ----------------------------------------------------------------------------
def _vmem_budgets():
    cap = 64 << 20                                     # conservative (v7x) default
    try:
        cap = int(pltpu.get_tpu_info().vmem_capacity_bytes)
    except Exception:
        pass
    tile_budget = max(4 << 20, min(int(cap * 0.30), 26 << 20))
    vmem_limit = max(32 << 20, min(int(cap * 0.70), 96 << 20))
    return tile_budget, vmem_limit


def _choose_row_tile(H, W, Cin, C4, Cout, budget_bytes, batch):
    def est(th):
        rows = th * W
        blk_in = 2 * (rows * Cin + W * Cin) * 2            # dbl-buffered bf16 inputs
        blk_out = 2 * rows * 4 * Cout * 2                  # dbl-buffered bf16 output
        wts = (2 * (Cin * C4 + (4 * C4) * (4 * C4) + (4 * C4) * (4 * Cout)) * 2
               + 2 * (C4 + 4 * C4 + 4 * Cout) * 4)
        scratch = (th + 1) * W * C4 * 4                    # f32 y1 scratch
        temps = (rows * C4 * 4 * 3                         # y1 + shifted copy
                 + rows * 4 * C4 * (2 + 4 + 2)             # x4 bf16, z f32/bf16
                 + rows * 4 * Cout * 4)                    # y3 f32
        return blk_in + blk_out + wts + scratch + temps

    th = 1
    for cand in range(H, 0, -1):                           # largest fitting tile
        if est(cand) <= budget_bytes:
            th = cand
            break
    # Keep >= 2 grid steps so v7x's 2 TensorCores both get work.
    if batch * ((H + th - 1) // th) < 2 and H >= 2:
        th = (H + 1) // 2
    return th


def _fold_bn(conv_bias, gamma, beta, running_mean, running_var, eps=1e-5):
    scale = gamma / jnp.sqrt(running_var + eps)
    bias = (conv_bias - running_mean) * scale + beta
    return scale, bias


# ----------------------------------------------------------------------------
# Public wrapper: NCHW in / NCHW out (bf16), matches DecoderBlock.forward (BN eval).
# ----------------------------------------------------------------------------
def decoder_block_forward(x_nchw, params, eps=1e-5, split_stage2=None):
    B, Cin, H, W = x_nchw.shape
    C4 = params["w1"].shape[1]
    Cout = params["w3"].shape[1]
    if split_stage2 is None:
        split_stage2 = C4 >= 128       # only worth it when stage 2 is MXU-bound

    # ---- trace-time folding: BN scale into weights, biases into per-channel b
    s1, b1 = _fold_bn(params["cb1"], params["g1"], params["be1"],
                      params["rm1"], params["rv1"], eps)
    s2, b2 = _fold_bn(params["db2"], params["g2"], params["be2"],
                      params["rm2"], params["rv2"], eps)
    s3, b3 = _fold_bn(params["cb3"], params["g3"], params["be3"],
                      params["rm3"], params["rv3"], eps)

    w1s = (params["w1"] * s1[None, :]).astype(jnp.bfloat16)            # (Cin, C4)
    b1r = b1.reshape(1, C4).astype(jnp.float32)

    # ConvTranspose weight (C4_in, C4_out, 3, 3).  Output-parity decomposition:
    #   ee: out[2m  ,2n  ] = a A11
    #   eo: out[2m  ,2n+1] = a A12 + b A10
    #   oe: out[2m+1,2n  ] = a A21 + c A01
    #   oo: out[2m+1,2n+1] = a A22 + b A20 + c A02 + d A00
    # with taps a=y1[m,n], b=y1[m,n+1], c=y1[m+1,n], d=y1[m+1,n+1].
    wt = params["w2t"]
    A = lambda ky, kx: wt[:, :, ky, kx]
    Z = jnp.zeros((C4, C4), jnp.float32)
    if split_stage2:
        w2a = jnp.block([[A(1, 1), A(1, 2)],
                         [Z,       A(1, 0)]])                          # (2C4, 2C4)
        w2b = jnp.block([[A(2, 1), A(2, 2)],
                         [Z,       A(2, 0)],
                         [A(0, 1), A(0, 2)],
                         [Z,       A(0, 0)]])                          # (4C4, 2C4)
        w2a = (w2a * jnp.tile(s2, 2)[None, :]).astype(jnp.bfloat16)
        w2b = (w2b * jnp.tile(s2, 2)[None, :]).astype(jnp.bfloat16)
        w2_args = (w2a, w2b)
        w2_specs = [pl.BlockSpec((2 * C4, 2 * C4), lambda b, i: (0, 0)),
                    pl.BlockSpec((4 * C4, 2 * C4), lambda b, i: (0, 0))]
    else:
        w2_all = jnp.block([
            [A(1, 1), A(1, 2), A(2, 1), A(2, 2)],
            [Z,       A(1, 0), Z,       A(2, 0)],
            [Z,       Z,       A(0, 1), A(0, 2)],
            [Z,       Z,       Z,       A(0, 0)],
        ])
        w2_all = (w2_all * jnp.tile(s2, 4)[None, :]).astype(jnp.bfloat16)
        w2_args = (w2_all,)
        w2_specs = [pl.BlockSpec((4 * C4, 4 * C4), lambda b, i: (0, 0))]
    b2_all = jnp.tile(b2, 4).reshape(1, 4 * C4).astype(jnp.float32)

    w3s = params["w3"] * s3[None, :]                                   # (C4, Cout)
    w3_all = jnp.kron(jnp.eye(4, dtype=jnp.float32), w3s).astype(jnp.bfloat16)
    b3_all = jnp.tile(b3, 4).reshape(1, 4 * Cout).astype(jnp.float32)

    # ---- tiling / padding (no right-halo column: W stays a multiple of 8) ---
    tile_budget, vmem_limit = _vmem_budgets()
    TH = _choose_row_tile(H, W, Cin, C4, Cout, tile_budget, B)
    nI = (H + TH - 1) // TH
    Hpad = nI * TH + 1            # +1 bottom halo row; extra rows are zeros

    x = jnp.transpose(x_nchw, (0, 2, 3, 1)).astype(jnp.bfloat16)       # NHWC
    xp = jnp.pad(x, ((0, 0), (0, Hpad - H), (0, 0), (0, 0)))

    kernel = functools.partial(_decoder_block_kernel, H=H, split=split_stage2)

    # NOTE: invariant weight/bias blocks could be single-buffered via
    # pipeline_mode=pl.Buffered(1) for extra VMEM headroom on v7x; omitted to
    # keep lowering maximally portable (they are small relative to the budget).
    o = pl.pallas_call(
        kernel,
        out_shape=jax.ShapeDtypeStruct((B, nI * TH, W, 4 * Cout), jnp.bfloat16),
        grid_spec=pltpu.PrefetchScalarGridSpec(
            num_scalar_prefetch=0,
            grid=(B, nI),
            in_specs=[
                pl.BlockSpec((1, TH, W, Cin), lambda b, i: (b, i, 0, 0)),
                pl.BlockSpec((1, 1, W, Cin), lambda b, i: (b, (i + 1) * TH, 0, 0)),
                pl.BlockSpec((Cin, C4), lambda b, i: (0, 0)),
                pl.BlockSpec((1, C4), lambda b, i: (0, 0)),
                *w2_specs,
                pl.BlockSpec((1, 4 * C4), lambda b, i: (0, 0)),
                pl.BlockSpec((4 * C4, 4 * Cout), lambda b, i: (0, 0)),
                pl.BlockSpec((1, 4 * Cout), lambda b, i: (0, 0)),
            ],
            out_specs=pl.BlockSpec((1, TH, W, 4 * Cout), lambda b, i: (b, i, 0, 0)),
            scratch_shapes=[pltpu.VMEM((TH + 1, W, C4), jnp.float32)],
        ),
        compiler_params=pltpu.CompilerParams(
            dimension_semantics=("parallel", "parallel"),
            vmem_limit_bytes=vmem_limit,
        ),
    )(xp, xp, w1s, b1r, *w2_args, b2_all, w3_all, b3_all)

    # Single fused de-interleave of the 4 phases + NCHW permute (one HBM pass).
    o = o[:, :H]
    o = jnp.transpose(o.reshape(B, H, W, 2, 2, Cout), (0, 5, 1, 3, 2, 4))
    return o.reshape(B, Cout, 2 * H, 2 * W)


# ----------------------------------------------------------------------------
# Deterministic parameter init (DecoderBlock(in_channels, n_filters) shapes).
# ----------------------------------------------------------------------------
def init_params(key, in_channels, n_filters):
    c4 = in_channels // 4
    ks = jax.random.split(key, 16)
    nrm = lambda k, shape, s=0.1: s * jax.random.normal(k, shape, jnp.float32)
    p = {}
    p["w1"] = nrm(ks[0], (in_channels, c4), 0.2)      # conv1 1x1 (Cin, C4)
    p["cb1"] = nrm(ks[1], (c4,), 0.05)
    p["g1"] = 1.0 + nrm(ks[2], (c4,))
    p["be1"] = nrm(ks[3], (c4,))
    p["rm1"] = nrm(ks[4], (c4,))
    p["rv1"] = 1.0 + jnp.abs(nrm(ks[5], (c4,)))

    p["w2t"] = nrm(ks[6], (c4, c4, 3, 3), 0.2)        # ConvTranspose (in,out,kh,kw)
    p["db2"] = nrm(ks[7], (c4,), 0.05)
    p["g2"] = 1.0 + nrm(ks[8], (c4,))
    p["be2"] = nrm(ks[9], (c4,))
    p["rm2"] = nrm(ks[10], (c4,))
    p["rv2"] = 1.0 + jnp.abs(nrm(ks[11], (c4,)))

    p["w3"] = nrm(ks[12], (c4, n_filters), 0.2)       # conv3 1x1 (C4, Cout)
    p["cb3"] = nrm(ks[13], (n_filters,), 0.05)
    p["g3"] = 1.0 + nrm(ks[14], (n_filters,))
    p["be3"] = nrm(ks[15], (n_filters,))
    p["rm3"] = jnp.zeros((n_filters,), jnp.float32)
    p["rv3"] = jnp.ones((n_filters,), jnp.float32)
    return p


# ----------------------------------------------------------------------------
# Pure-JAX reference (independent of the phase decomposition) for correctness.
# ConvTranspose2d == lhs-dilated conv with the spatially flipped kernel.
# ----------------------------------------------------------------------------
def _ref_forward(x_nchw, params, eps=1e-5):
    x = jnp.transpose(x_nchw, (0, 2, 3, 1)).astype(jnp.bfloat16)
    s1, b1 = _fold_bn(params["cb1"], params["g1"], params["be1"],
                      params["rm1"], params["rv1"], eps)
    s2, b2 = _fold_bn(params["db2"], params["g2"], params["be2"],
                      params["rm2"], params["rv2"], eps)
    s3, b3 = _fold_bn(params["cb3"], params["g3"], params["be3"],
                      params["rm3"], params["rv3"], eps)

    w1s = (params["w1"] * s1[None, :]).astype(jnp.bfloat16)
    y1 = jnp.einsum("bhwc,cd->bhwd", x, w1s, preferred_element_type=jnp.float32)
    y1 = jnp.maximum(y1 + b1, 0.0).astype(jnp.bfloat16)

    wt = params["w2t"]                                    # (C4_in, C4_out, 3, 3)
    weq = jnp.transpose(wt, (2, 3, 0, 1))[::-1, ::-1, :, :]
    weq = (weq * s2[None, None, None, :]).astype(jnp.bfloat16)
    y2 = lax.conv_general_dilated(
        y1, weq, window_strides=(1, 1), padding=((1, 2), (1, 2)),
        lhs_dilation=(2, 2), dimension_numbers=("NHWC", "HWIO", "NHWC"),
        preferred_element_type=jnp.float32)
    y2 = jnp.maximum(y2 + b2, 0.0).astype(jnp.bfloat16)

    w3s = (params["w3"] * s3[None, :]).astype(jnp.bfloat16)
    y3 = jnp.einsum("bhwc,cd->bhwd", y2, w3s, preferred_element_type=jnp.float32)
    y3 = jnp.maximum(y3 + b3, 0.0)
    return jnp.transpose(y3, (0, 3, 1, 2))


if __name__ == "__main__":
    key = jax.random.PRNGKey(0)
    kx, kp = jax.random.split(key)

    B, in_channels, H, W = 2, 16, 16, 16
    n_filters = 8

    x = jax.random.normal(kx, (B, in_channels, H, W), jnp.float32)
    params = init_params(kp, in_channels, n_filters)

    ref = _ref_forward(x, params)

    out = jax.jit(decoder_block_forward)(x, params)
    out = jax.block_until_ready(out)
    assert out.shape == (B, n_filters, 2 * H, 2 * W), out.shape
    err = float(jnp.max(jnp.abs(out.astype(jnp.float32) - ref)))
    assert jnp.allclose(out.astype(jnp.float32), ref, atol=3e-2, rtol=3e-2), err

    # Also validate the split-stage-2 path (auto-selected when C4 >= 128).
    out_s = jax.jit(functools.partial(decoder_block_forward, split_stage2=True))(x, params)
    out_s = jax.block_until_ready(out_s)
    err_s = float(jnp.max(jnp.abs(out_s.astype(jnp.float32) - ref)))
    assert jnp.allclose(out_s.astype(jnp.float32), ref, atol=3e-2, rtol=3e-2), err_s

    print("KERNEL_OK")
</pallas_src>

<mosaic_0001>
module attributes {stable_mosaic.version = 11 : i64} {
  func.func @_decoder_block_kernel(%arg0: i32, %arg1: i32, %arg2: memref<1x16x16x16xbf16, #tpu.memory_space<vmem>>, %arg3: memref<1x1x16x16xbf16, #tpu.memory_space<vmem>>, %arg4: memref<16x4xbf16, #tpu.memory_space<vmem>>, %arg5: memref<1x4xf32, #tpu.memory_space<vmem>>, %arg6: memref<16x16xbf16, #tpu.memory_space<vmem>>, %arg7: memref<1x16xf32, #tpu.memory_space<vmem>>, %arg8: memref<16x32xbf16, #tpu.memory_space<vmem>>, %arg9: memref<1x32xf32, #tpu.memory_space<vmem>>, %arg10: memref<1x16x16x32xbf16, #tpu.memory_space<vmem>>, %arg11: memref<17x16x4xf32, #tpu.memory_space<vmem>>) attributes {dimension_semantics = [#tpu.dimension_semantics<parallel>, #tpu.dimension_semantics<parallel>], iteration_bounds = array<i64: 2, 1>, scalar_prefetch = 0 : i64, scratch_operands = 1 : i64, tpu.core_type = #tpu.core_type<tc>, window_params = [{transform_indices = @transform_0, window_bounds = array<i64: 1, 16, 16, 16>}, {transform_indices = @transform_1, window_bounds = array<i64: 1, 1, 16, 16>}, {pipeline_mode = #tpu.pipeline_mode<synchronous>, transform_indices = @transform_2, window_bounds = array<i64: 16, 4>}, {pipeline_mode = #tpu.pipeline_mode<synchronous>, transform_indices = @transform_3, window_bounds = array<i64: 1, 4>}, {pipeline_mode = #tpu.pipeline_mode<synchronous>, transform_indices = @transform_4, window_bounds = array<i64: 16, 16>}, {pipeline_mode = #tpu.pipeline_mode<synchronous>, transform_indices = @transform_5, window_bounds = array<i64: 1, 16>}, {pipeline_mode = #tpu.pipeline_mode<synchronous>, transform_indices = @transform_6, window_bounds = array<i64: 16, 32>}, {pipeline_mode = #tpu.pipeline_mode<synchronous>, transform_indices = @transform_7, window_bounds = array<i64: 1, 32>}, {transform_indices = @transform_8, window_bounds = array<i64: 1, 16, 16, 32>}]} {
    %c0 = arith.constant 0 : index
    %c0_0 = arith.constant 0 : index
    %c0_1 = arith.constant 0 : index
    %c0_2 = arith.constant 0 : index
    %0 = vector.load %arg2[%c0, %c0_0, %c0_1, %c0_2] : memref<1x16x16x16xbf16, #tpu.memory_space<vmem>>, vector<1x16x16x16xbf16>
    %1 = vector.shape_cast %0 : vector<1x16x16x16xbf16> to vector<256x16xbf16>
    %c0_3 = arith.constant 0 : index
    %c0_4 = arith.constant 0 : index
    %2 = vector.load %arg4[%c0_3, %c0_4] : memref<16x4xbf16, #tpu.memory_space<vmem>>, vector<16x4xbf16>
    %cst = arith.constant dense<0.000000e+00> : vector<256x4xf32>
    %3 = tpu.matmul %1, %2, %cst {dimension_numbers = #tpu.dot_dimension_numbers<[1], [0], [0], [1], [0, 0, 1, 1], [], []>} : vector<256x16xbf16>, vector<16x4xbf16>, vector<256x4xf32> -> vector<256x4xf32>
    %c0_5 = arith.constant 0 : index
    %c0_6 = arith.constant 0 : index
    %4 = vector.load %arg5[%c0_5, %c0_6] : memref<1x4xf32, #tpu.memory_space<vmem>>, vector<1x4xf32>
    %5 = vector.broadcast %4 : vector<1x4xf32> to vector<256x4xf32>
    %6 = arith.addf %3, %5 : vector<256x4xf32>
    %cst_7 = arith.constant 0.000000e+00 : f32
    %7 = vector.broadcast %cst_7 : f32 to vector<256x4xf32>
    %8 = arith.maximumf %6, %7 : vector<256x4xf32>
    %9 = vector.shape_cast %8 : vector<256x4xf32> to vector<16x16x4xf32>
    %c0_8 = arith.constant 0 : index
    %c0_9 = arith.constant 0 : index
    %c0_10 = arith.constant 0 : index
    %10 = vector.load %arg11[%c0_8, %c0_9, %c0_10] : memref<17x16x4xf32, #tpu.memory_space<vmem>>, vector<16x16x4xf32>
    tpu.vector_store %arg11[%c0_8, %c0_9, %c0_10], %9 {strides = array<i32>} : memref<17x16x4xf32, #tpu.memory_space<vmem>>, vector<16x16x4xf32>,
    %c0_11 = arith.constant 0 : index
    %c0_12 = arith.constant 0 : index
    %c0_13 = arith.constant 0 : index
    %c0_14 = arith.constant 0 : index
    %11 = vector.load %arg3[%c0_11, %c0_12, %c0_13, %c0_14] : memref<1x1x16x16xbf16, #tpu.memory_space<vmem>>, vector<1x1x16x16xbf16>
    %12 = vector.shape_cast %11 : vector<1x1x16x16xbf16> to vector<16x16xbf16>
    %c0_15 = arith.constant 0 : index
    %c0_16 = arith.constant 0 : index
    %13 = vector.load %arg4[%c0_15, %c0_16] : memref<16x4xbf16, #tpu.memory_space<vmem>>, vector<16x4xbf16>
    %cst_17 = arith.constant dense<0.000000e+00> : vector<16x4xf32>
    %14 = tpu.matmul %12, %13, %cst_17 {dimension_numbers = #tpu.dot_dimension_numbers<[1], [0], [0], [1], [0, 0, 1, 1], [], []>} : vector<16x16xbf16>, vector<16x4xbf16>, vector<16x4xf32> -> vector<16x4xf32>
    %c0_18 = arith.constant 0 : index
    %c0_19 = arith.constant 0 : index
    %15 = vector.load %arg5[%c0_18, %c0_19] : memref<1x4xf32, #tpu.memory_space<vmem>>, vector<1x4xf32>
    %16 = vector.broadcast %15 : vector<1x4xf32> to vector<16x4xf32>
    %17 = arith.addf %14, %16 : vector<16x4xf32>
    %cst_20 = arith.constant 0.000000e+00 : f32
    %18 = vector.broadcast %cst_20 : f32 to vector<16x4xf32>
    %19 = arith.maximumf %17, %18 : vector<16x4xf32>
    %20 = vector.shape_cast %19 : vector<16x4xf32> to vector<1x16x4xf32>
    %c16 = arith.constant 16 : index
    %c0_21 = arith.constant 0 : index
    %c0_22 = arith.constant 0 : index
    %21 = vector.load %arg11[%c16, %c0_21, %c0_22] : memref<17x16x4xf32, #tpu.memory_space<vmem>>, vector<1x16x4xf32>
    tpu.vector_store %arg11[%c16, %c0_21, %c0_22], %20 {strides = array<i32>} : memref<17x16x4xf32, #tpu.memory_space<vmem>>, vector<1x16x4xf32>,
    %c16_i32 = arith.constant 16 : i32
    %22 = arith.muli %arg1, %c16_i32 : i32
    %c16_i32_23 = arith.constant 16 : i32
    %23 = arith.subi %c16_i32_23, %22 : i32
    %c16_i32_24 = arith.constant 16 : i32
    %24 = arith.cmpi sle, %23, %c16_i32_24 : i32
    %25 = arith.extui %24 : i1 to i32
    %c0_i32 = arith.constant 0 : i32
    %26 = arith.cmpi ne, %25, %c0_i32 : i32
    scf.if %26 {
      %cst_45 = arith.constant 0.000000e+00 : f32
      %56 = vector.broadcast %cst_45 : f32 to vector<1x16x4xf32>
      %57 = arith.index_cast %23 : i32 to index
      %c0_46 = arith.constant 0 : index
      %c0_47 = arith.constant 0 : index
      %58 = vector.load %arg11[%57, %c0_46, %c0_47] : memref<17x16x4xf32, #tpu.memory_space<vmem>>, vector<1x16x4xf32>
      tpu.vector_store %arg11[%57, %c0_46, %c0_47], %56 {strides = array<i32>} : memref<17x16x4xf32, #tpu.memory_space<vmem>>, vector<1x16x4xf32>,
    } else {
    }
    %c0_25 = arith.constant 0 : index
    %c0_26 = arith.constant 0 : index
    %c0_27 = arith.constant 0 : index
    %27 = vector.load %arg11[%c0_25, %c0_26, %c0_27] : memref<17x16x4xf32, #tpu.memory_space<vmem>>, vector<17x16x4xf32>
    %28 = vector.extract_strided_slice %27 {offsets = [0, 1, 0], sizes = [17, 15, 4], strides = [1, 1, 1]} : vector<17x16x4xf32> to vector<17x15x4xf32>
    %cst_28 = arith.constant 0.000000e+00 : f32
    %29 = vector.broadcast %cst_28 : f32 to vector<17x1x4xf32>
    %30 = tpu.concatenate %28, %29 in 1 : vector<17x15x4xf32>, vector<17x1x4xf32> -> vector<17x16x4xf32>
    %31 = vector.extract_strided_slice %27 {offsets = [0, 0, 0], sizes = [16, 16, 4], strides = [1, 1, 1]} : vector<17x16x4xf32> to vector<16x16x4xf32>
    %32 = vector.extract_strided_slice %30 {offsets = [0, 0, 0], sizes = [16, 16, 4], strides = [1, 1, 1]} : vector<17x16x4xf32> to vector<16x16x4xf32>
    %33 = vector.extract_strided_slice %27 {offsets = [1, 0, 0], sizes = [16, 16, 4], strides = [1, 1, 1]} : vector<17x16x4xf32> to vector<16x16x4xf32>
    %34 = vector.extract_strided_slice %30 {offsets = [1, 0, 0], sizes = [16, 16, 4], strides = [1, 1, 1]} : vector<17x16x4xf32> to vector<16x16x4xf32>
    %35 = tpu.concatenate %31, %32, %33, %34 in 2 : vector<16x16x4xf32>, vector<16x16x4xf32>, vector<16x16x4xf32>, vector<16x16x4xf32> -> vector<16x16x16xf32>
    %36 = arith.truncf %35 : vector<16x16x16xf32> to vector<16x16x16xbf16>
    %37 = vector.shape_cast %36 : vector<16x16x16xbf16> to vector<256x16xbf16>
    %c0_29 = arith.constant 0 : index
    %c0_30 = arith.constant 0 : index
    %38 = vector.load %arg6[%c0_29, %c0_30] : memref<16x16xbf16, #tpu.memory_space<vmem>>, vector<16x16xbf16>
    %cst_31 = arith.constant dense<0.000000e+00> : vector<256x16xf32>
    %39 = tpu.matmul %37, %38, %cst_31 {dimension_numbers = #tpu.dot_dimension_numbers<[1], [0], [0], [1], [0, 0, 1, 1], [], []>} : vector<256x16xbf16>, vector<16x16xbf16>, vector<256x16xf32> -> vector<256x16xf32>
    %c0_32 = arith.constant 0 : index
    %c0_33 = arith.constant 0 : index
    %40 = vector.load %arg7[%c0_32, %c0_33] : memref<1x16xf32, #tpu.memory_space<vmem>>, vector<1x16xf32>
    %41 = vector.broadcast %40 : vector<1x16xf32> to vector<256x16xf32>
    %42 = arith.addf %39, %41 : vector<256x16xf32>
    %cst_34 = arith.constant 0.000000e+00 : f32
    %43 = vector.broadcast %cst_34 : f32 to vector<256x16xf32>
    %44 = arith.maximumf %42, %43 : vector<256x16xf32>
    %45 = arith.truncf %44 : vector<256x16xf32> to vector<256x16xbf16>
    %c0_35 = arith.constant 0 : index
    %c0_36 = arith.constant 0 : index
    %46 = vector.load %arg8[%c0_35, %c0_36] : memref<16x32xbf16, #tpu.memory_space<vmem>>, vector<16x32xbf16>
    %cst_37 = arith.constant dense<0.000000e+00> : vector<256x32xf32>
    %47 = tpu.matmul %45, %46, %cst_37 {dimension_numbers = #tpu.dot_dimension_numbers<[1], [0], [0], [1], [0, 0, 1, 1], [], []>} : vector<256x16xbf16>, vector<16x32xbf16>, vector<256x32xf32> -> vector<256x32xf32>
    %c0_38 = arith.constant 0 : index
    %c0_39 = arith.constant 0 : index
    %48 = vector.load %arg9[%c0_38, %c0_39] : memref<1x32xf32, #tpu.memory_space<vmem>>, vector<1x32xf32>
    %49 = vector.broadcast %48 : vector<1x32xf32> to vector<256x32xf32>
    %50 = arith.addf %47, %49 : vector<256x32xf32>
    %cst_40 = arith.constant 0.000000e+00 : f32
    %51 = vector.broadcast %cst_40 : f32 to vector<256x32xf32>
    %52 = arith.maximumf %50, %51 : vector<256x32xf32>
    %53 = vector.shape_cast %52 : vector<256x32xf32> to vector<1x16x16x32xf32>
    %54 = arith.truncf %53 : vector<1x16x16x32xf32> to vector<1x16x16x32xbf16>
    %c0_41 = arith.constant 0 : index
    %c0_42 = arith.constant 0 : index
    %c0_43 = arith.constant 0 : index
    %c0_44 = arith.constant 0 : index
    %55 = vector.load %arg10[%c0_41, %c0_42, %c0_43, %c0_44] : memref<1x16x16x32xbf16, #tpu.memory_space<vmem>>, vector<1x16x16x32xbf16>
    tpu.vector_store %arg10[%c0_41, %c0_42, %c0_43, %c0_44], %54 {strides = array<i32>} : memref<1x16x16x32xbf16, #tpu.memory_space<vmem>>, vector<1x16x16x32xbf16>,
    return
  }
  func.func @transform_0(%arg0: i32, %arg1: i32) -> (i32, i32, i32, i32) {
    %c0_i32 = arith.constant 0 : i32
    %c0_i32_0 = arith.constant 0 : i32
    %c0_i32_1 = arith.constant 0 : i32
    return %arg0, %arg1, %c0_i32, %c0_i32_0 : i32, i32, i32, i32
  }
  func.func @transform_1(%arg0: i32, %arg1: i32) -> (i32, i32, i32, i32) {
    %c1_i32 = arith.constant 1 : i32
    %0 = arith.addi %arg1, %c1_i32 : i32
    %c16_i32 = arith.constant 16 : i32
    %1 = arith.muli %0, %c16_i32 : i32
    %c0_i32 = arith.constant 0 : i32
    %c0_i32_0 = arith.constant 0 : i32
    %c0_i32_1 = arith.constant 0 : i32
    return %arg0, %1, %c0_i32, %c0_i32_0 : i32, i32, i32, i32
  }
  func.func @transform_2(%arg0: i32, %arg1: i32) -> (i32, i32) {
    %c0_i32 = arith.constant 0 : i32
    %c0_i32_0 = arith.constant 0 : i32
    %c0_i32_1 = arith.constant 0 : i32
    return %c0_i32, %c0_i32_0 : i32, i32
  }
  func.func @transform_3(%arg0: i32, %arg1: i32) -> (i32, i32) {
    %c0_i32 = arith.constant 0 : i32
    %c0_i32_0 = arith.constant 0 : i32
    %c0_i32_1 = arith.constant 0 : i32
    return %c0_i32, %c0_i32_0 : i32, i32
  }
  func.func @transform_4(%arg0: i32, %arg1: i32) -> (i32, i32) {
    %c0_i32 = arith.constant 0 : i32
    %c0_i32_0 = arith.constant 0 : i32
    %c0_i32_1 = arith.constant 0 : i32
    return %c0_i32, %c0_i32_0 : i32, i32
  }
  func.func @transform_5(%arg0: i32, %arg1: i32) -> (i32, i32) {
    %c0_i32 = arith.constant 0 : i32
    %c0_i32_0 = arith.constant 0 : i32
    %c0_i32_1 = arith.constant 0 : i32
    return %c0_i32, %c0_i32_0 : i32, i32
  }
  func.func @transform_6(%arg0: i32, %arg1: i32) -> (i32, i32) {
    %c0_i32 = arith.constant 0 : i32
    %c0_i32_0 = arith.constant 0 : i32
    %c0_i32_1 = arith.constant 0 : i32
    return %c0_i32, %c0_i32_0 : i32, i32
  }
  func.func @transform_7(%arg0: i32, %arg1: i32) -> (i32, i32) {
    %c0_i32 = arith.constant 0 : i32
    %c0_i32_0 = arith.constant 0 : i32
    %c0_i32_1 = arith.constant 0 : i32
    return %c0_i32, %c0_i32_0 : i32, i32
  }
  func.func @transform_8(%arg0: i32, %arg1: i32) -> (i32, i32, i32, i32) {
    %c0_i32 = arith.constant 0 : i32
    %c0_i32_0 = arith.constant 0 : i32
    %c0_i32_1 = arith.constant 0 : i32
    return %arg0, %arg1, %c0_i32, %c0_i32_0 : i32, i32, i32, i32
  }
}

</mosaic_0001>

<bundles_post_ra>
// kernel: tile.28
= control target key start
LH: loop header
LB: loop body
LE: loop exit
PB: predicated region body
PF: predicated region fallthrough
CT: control target
= control target key end

     0   :  { %s22_s0 = inlined_call_operand.vmem [shape: f32[8], index: 0, kind: input, shape index: {}]   ;;  %s23_s1 = inlined_call_operand.vmem [shape: f32[4,8], index: 1, kind: output, shape index: {}]  }
   0x1   :  { %v4_v0 = vld [vmem:[%s22_s0] ss:$0 sm:$0xff] }
   0x2   :  { %5 = vst [vmem:[%s23_s1] sm:$0xf] %v4_v0 }

// kernel: tile.23
= control target key start
LH: loop header
LB: loop body
LE: loop exit
PB: predicated region body
PF: predicated region fallthrough
CT: control target
= control target key end

     0   :  { %s22_s0 = inlined_call_operand.vmem [shape: f32[4], index: 0, kind: input, shape index: {}]   ;;  %s23_s1 = inlined_call_operand.vmem [shape: f32[4,4], index: 1, kind: output, shape index: {}]  }
   0x1   :  { %v4_v0 = vld [vmem:[%s22_s0] ss:$0 sm:$0xff] }
   0x2   :  { %5 = vst [vmem:[%s23_s1] sm:$0xf] %v4_v0 }

// kernel: tile.29
= control target key start
LH: loop header
LB: loop body
LE: loop exit
PB: predicated region body
PF: predicated region fallthrough
CT: control target
= control target key end

     0   :  { %s37_s8 = smov 8   ;;  %s38_s9 = smov 16   ;;  %vm7_vm0 = vcmask 64512   ;;  %vm13_vm1 = vcmask 261312   ;;  %vm19_vm2 = vcmask 195712   ;;  %vm25_vm3 = vcmask 130112   ;;  %s55_s0 = inlined_call_operand.vmem [shape: f32[4,8], index: 0, kind: input, shape index: {}]   ;;  %s56_s1 = inlined_call_operand.vmem [shape: f32[1,32], index: 1, kind: output, shape index: {}]  }
   0x1   :  { %v4_v0 = vld [vmem:[%s55_s0] sm:$0xf]  ;;  %s36_s0 = smov 24  }
   0x2   :  { %5 = vst [vmem:[#allocation1] sm:$0xf] %v4_v0 }
   0x9   :  { %v10_v1 = vld [vmem:[#allocation1 + $0x3] sm:$0x1]   ;;  %v22_v2 = vld [vmem:[#allocation1 + $0x1] sm:$0x1]   ;;  %v16_v3 = vld [vmem:[#allocation1 + $0x2] sm:$0x1]  }
   0xa   :  { %11 = vrot.lane.b32.xlu0 %v10_v1, %s36_s0  ;;  %23 = vrot.lane.b32.xlu1 %v22_v2, %s37_s8  ;;  %v6_v4 = vld [vmem:[#allocation1] sm:$0x1]  }
   0xb   :  { %8 = vst.msk [vmem:[#allocation0] sm:$0x1] %vm7_vm0, %v6_v4  }
  0x12   :  { %17 = vrot.lane.b32.xlu0 %v16_v3, %s38_s9 }
  0x7c   :  { %v12_v5 = vpop.permute.xlu0 %11   ;;  %v24_v6 = vpop.permute.xlu1 %23  }
  0x7d   :  { %14 = vst.msk [vmem:[#allocation0] sm:$0x1] %vm13_vm1, %v12_v5  }
  0x84   :  { %v18_v7 = vpop.permute.xlu0 %17  }
  0x85   :  { %20 = vst.msk [vmem:[#allocation0] sm:$0x1] %vm19_vm2, %v18_v7  }
  0x86   :  { %26 = vst.msk [vmem:[#allocation0] sm:$0x1] %vm25_vm3, %v24_v6  }
  0x8d   :  { %v29_v8 = vld [vmem:[#allocation0] sm:$0x1] }
  0x8e   :  { %32 = vst [vmem:[%s56_s1] sm:$0x1] %v29_v8 }

// kernel: tile.24
= control target key start
LH: loop header
LB: loop body
LE: loop exit
PB: predicated region body
PF: predicated region fallthrough
CT: control target
= control target key end

     0   :  { %s37_s8 = smov 4   ;;  %s38_s9 = smov 8   ;;  %vm7_vm0 = vcmask 31744   ;;  %vm13_vm1 = vcmask 130144   ;;  %vm19_vm2 = vcmask 97344   ;;  %vm25_vm3 = vcmask 64544   ;;  %s55_s0 = inlined_call_operand.vmem [shape: f32[4,4], index: 0, kind: input, shape index: {}]   ;;  %s56_s1 = inlined_call_operand.vmem [shape: f32[1,16], index: 1, kind: output, shape index: {}]  }
   0x1   :  { %v4_v0 = vld [vmem:[%s55_s0] sm:$0xf]  ;;  %s36_s0 = smov 12  }
   0x2   :  { %5 = vst [vmem:[#allocation1] sm:$0xf] %v4_v0 }
   0x9   :  { %v10_v1 = vld [vmem:[#allocation1 + $0x3] sm:$0x1]   ;;  %v22_v2 = vld [vmem:[#allocation1 + $0x1] sm:$0x1]   ;;  %v16_v3 = vld [vmem:[#allocation1 + $0x2] sm:$0x1]  }
   0xa   :  { %11 = vrot.lane.b32.xlu0 %v10_v1, %s36_s0  ;;  %23 = vrot.lane.b32.xlu1 %v22_v2, %s37_s8  ;;  %v6_v4 = vld [vmem:[#allocation1] sm:$0x1]  }
   0xb   :  { %8 = vst.msk [vmem:[#allocation0] sm:$0x1] %vm7_vm0, %v6_v4  }
  0x12   :  { %17 = vrot.lane.b32.xlu0 %v16_v3, %s38_s9 }
  0x7c   :  { %v12_v5 = vpop.permute.xlu0 %11   ;;  %v24_v6 = vpop.permute.xlu1 %23  }
  0x7d   :  { %14 = vst.msk [vmem:[#allocation0] sm:$0x1] %vm13_vm1, %v12_v5  }
  0x84   :  { %v18_v7 = vpop.permute.xlu0 %17  }
  0x85   :  { %20 = vst.msk [vmem:[#allocation0] sm:$0x1] %vm19_vm2, %v18_v7  }
  0x86   :  { %26 = vst.msk [vmem:[#allocation0] sm:$0x1] %vm25_vm3, %v24_v6  }
  0x8d   :  { %v29_v8 = vld [vmem:[#allocation0] sm:$0x1] }
  0x8e   :  { %32 = vst [vmem:[%s56_s1] sm:$0x1] %v29_v8 }

// kernel: mul.37
= control target key start
LH: loop header
LB: loop body
LE: loop exit
PB: predicated region body
PF: predicated region fallthrough
CT: control target
= control target key end

     0   :  { %s37_s8 = smov 4   ;;  %s38_s9 = smov 8   ;;  %vm7_vm0 = vcmask 31744   ;;  %vm13_vm1 = vcmask 130144   ;;  %vm19_vm2 = vcmask 97344   ;;  %vm25_vm3 = vcmask 64544   ;;  %s55_s0 = inlined_call_operand.vmem [shape: f32[4,4], index: 0, kind: input, shape index: {}]   ;;  %s56_s1 = inlined_call_operand.vmem [shape: f32[16], index: 1, kind: output, shape index: {}]  }
   0x1   :  { %v4_v0 = vld [vmem:[%s55_s0] sm:$0xf]  ;;  %s36_s0 = smov 12  }
   0x2   :  { %5 = vst [vmem:[#allocation1] sm:$0xf] %v4_v0 }
   0x9   :  { %v10_v1 = vld [vmem:[#allocation1 + $0x3] sm:$0x1]   ;;  %v22_v2 = vld [vmem:[#allocation1 + $0x1] sm:$0x1]   ;;  %v16_v3 = vld [vmem:[#allocation1 + $0x2] sm:$0x1]  }
   0xa   :  { %11 = vrot.lane.b32.xlu0 %v10_v1, %s36_s0  ;;  %23 = vrot.lane.b32.xlu1 %v22_v2, %s37_s8  ;;  %v6_v4 = vld [vmem:[#allocation1] sm:$0x1]  }
   0xb   :  { %8 = vst.msk [vmem:[#allocation0] sm:$0x1] %vm7_vm0, %v6_v4  }
  0x12   :  { %17 = vrot.lane.b32.xlu0 %v16_v3, %s38_s9 }
  0x7c   :  { %v12_v5 = vpop.permute.xlu0 %11   ;;  %v24_v6 = vpop.permute.xlu1 %23  }
  0x7d   :  { %14 = vst.msk [vmem:[#allocation0] sm:$0x1] %vm13_vm1, %v12_v5  }
  0x84   :  { %v18_v7 = vpop.permute.xlu0 %17  }
  0x85   :  { %20 = vst.msk [vmem:[#allocation0] sm:$0x1] %vm19_vm2, %v18_v7  }
  0x86   :  { %26 = vst.msk [vmem:[#allocation0] sm:$0x1] %vm25_vm3, %v24_v6  }
  0x8d   :  { %v29_v8 = vld [vmem:[#allocation0] sm:$0x1] }
  0x8e   :  { %32 = vst [vmem:[%s56_s1] sm:$0x1] %v29_v8 }

// kernel: decoder_block_forward.1
= control target key start
LH: loop header
LB: loop body
LE: loop exit
PB: predicated region body
PF: predicated region fallthrough
CT: control target
= control target key end

     0   :  { %s2554_s27 = smov 0   ;;  %s2556_s28 = smov 0   ;;  %s3245_s0 = inlined_call_operand.vmem [shape: bf16[2,17,16,16], index: 0, kind: input, shape index: {}, may-alias: {0,1}]   ;;  %s3246_s1 = inlined_call_operand.vmem [shape: bf16[2,17,16,16], index: 1, kind: input, shape index: {}, may-alias: {0,1}]   ;;  %s3247_s2 = inlined_call_operand.vmem [shape: bf16[16,4], index: 2, kind: input, shape index: {}]   ;;  %s3248_s3 = inlined_call_operand.vmem [shape: f32[1,4], index: 3, kind: input, shape index: {}]   ;;  %s3249_s4 = inlined_call_operand.vmem [shape: bf16[16,16], index: 4, kind: input, shape index: {}]   ;;  %s3250_s5 = inlined_call_operand.vmem [shape: f32[1,16], index: 5, kind: input, shape index: {}]   ;;  %s3251_s6 = inlined_call_operand.vmem [shape: bf16[16,32], index: 6, kind: input, shape index: {}]   ;;  %s3252_s7 = inlined_call_operand.vmem [shape: f32[1,32], index: 7, kind: input, shape index: {}]   ;;  %s3253_s8 = inlined_call_operand.vmem [shape: bf16[2,16,16,32], index: 8, kind: output, shape index: {}]  }
   0x1   :  { %s2558_s29 = smov 0  }
   0x2 LB: > { %s30_s30 = sadd.s32 1, %s2499_s28  ;;  %p2037_p0 = scmp.ge.s32.totalorder %s2503_s29, 1  ;;  %s2503_s29 = sphi %s2558_s29, %s18_s29   ;;  %s2499_s28 = sphi %s2556_s28, %s3255_s28   ;;  %s2495_s27 = sphi %s2554_s27, %s3254_s27  }
   0x3   : > { %p32_p1 = scmp.ge.s32.totalorder %s30_s30, 2  ;;  %p318_p2 = scmp.lt.s32.totalorder %s2503_s29, 3 }
   0x5   : > { %s3257_s30 = smov (%p32_p1, %s30_s30), 0  ;;  %p319_p3 = pnand %p2037_p0, %p318_p2 }
   0x6   : > { %p384_p4 = scmp.lt.s32.totalorder (!%p319_p3), %s2495_s27, 1  ;;  %s2505_s19 = smov (!%p319_p3), 4  }
   0x7   : > { %322 = sbr.rel (%p319_p3) target bundleno = 841 (0x349), region = 52  ;;  %s2506_s24 = smov (!%p319_p3), 8  }
   0x8   : > { %s2507_s25 = smov (!%p319_p3), 12  }
   0xc   : > { %v2198_v0 = vld [vmem:[%s3247_s2] sm:$0xff]  ;;  %s3259_s27 = smov (!%p384_p4, %s2495_s27), 1  ;;  %vm548_vm0 = vcmask 130048   ;;  %vm718_vm1 = vcmask 31744   ;;  %vm870_vm2 = vcmask 1046528   ;;  %vm1293_vm3 = vcmask 64512  }
   0xd   : > { %604 = vmatpush.bf16.msra.mxu0 %v2198_v0  ;;  %2203 = vmatpush.bf16.msra.mxu1 %v2198_v0  ;;  %s2206_s11 = smul.u32 136, %s3259_s27  ;;  %v2604_v9 = vld [vmem:[%s3248_s3] ss:$0 sm:$0xff]  ;;  %vm1326_vm4 = vcmask 97280   ;;  %s2181_s18 = sshll.u32 %s3259_s27, 7  ;;  %vm1881_vm5 = vcmask 257024  }
   0xe   : > { %v2200_v37 = vld [vmem:[%s3247_s2] sm:$0xff]  ;;  %s3120_s21 = scalar_lea.vmem %s3253_s8, %s2181_s18 }
   0xf   : > { %s2583_s14 = scalar_lea.vmem %s3245_s0, %s2206_s11  ;;  %s2180_s20 = sadd.s32 128, %s2206_s11 }
  0x10   : > { %v2182_v1 = vld [vmem:[%s2583_s14] sm:$0xff]  ;;  %v2183_v2 = vld [vmem:[%s2583_s14 + $0x8] sm:$0xff]  ;;  %v2184_v3 = vld [vmem:[%s2583_s14 + $0x10] sm:$0xff]  ;;  %s409_s23 = scalar_lea.vmem %s3246_s1, %s2180_s20 }
  0x11   : > { %2110 = vmatmul.msk.bf16.vlgmr.msra.gmra.mxu0 %vm548_vm0, %v2182_v1  ;;  %v2185_v4 = vld [vmem:[%s2583_s14 + $0x18] sm:$0xff]  ;;  %v2186_v5 = vld [vmem:[%s2583_s14 + $0x20] sm:$0xff]  ;;  %v2187_v6 = vld [vmem:[%s2583_s14 + $0x28] sm:$0xff]  ;;  %780 = vmatpush.bf16.msrb.mxu1 %v2200_v37 }
  0x12   : > { %v2188_v7 = vld [vmem:[%s2583_s14 + $0x30] sm:$0xff]  ;;  %v2189_v8 = vld [vmem:[%s2583_s14 + $0x38] sm:$0xff]  ;;  %v2190_v10 = vld [vmem:[%s2583_s14 + $0x40] sm:$0xff] }
  0x13   : > { %v2191_v17 = vld [vmem:[%s2583_s14 + $0x48] sm:$0xff]  ;;  %v2192_v24 = vld [vmem:[%s2583_s14 + $0x50] sm:$0xff]  ;;  %v2193_v32 = vld [vmem:[%s2583_s14 + $0x58] sm:$0xff] }
  0x14   : > { %v2195_v26 = vld [vmem:[%s2583_s14 + $0x68] sm:$0xff]  ;;  %v2196_v34 = vld [vmem:[%s2583_s14 + $0x70] sm:$0xff]  ;;  %v2194_v41 = vld [vmem:[%s2583_s14 + $0x60] sm:$0xff] }
  0x15   : > { %2123 = vmatmul.msk.bf16.vlgmr.msra.gmra.mxu1 %vm548_vm0, %v2195_v26  ;;  %v2197_v43 = vld [vmem:[%s2583_s14 + $0x78] sm:$0xff]  ;;  %v2199_v57 = vld [vmem:[%s409_s23] sm:$0xff] }
  0x21   : > { %2111 = vmatmul.msk.bf16.gmra.mxu0 %vm548_vm0, %v2183_v2 }
  0x25   : > { %2124 = vmatmul.msk.bf16.gmra.mxu1 %vm548_vm0, %v2196_v34 }
  0x31   : > { %2112 = vmatmul.msk.bf16.gmra.mxu0 %vm548_vm0, %v2184_v3 }
  0x35   : > { %2125 = vmatmul.msk.bf16.gmra.mxu1 %vm548_vm0, %v2197_v43 }
  0x41   : > { %2113 = vmatmul.msk.bf16.gmra.mxu0 %vm548_vm0, %v2185_v4 }
  0x45   : > { %2134 = vmatmul.msk.bf16.vlgmr.msrb.gmra.mxu1 %vm548_vm0, %v2199_v57 }
  0x51   : > { %2114 = vmatmul.msk.bf16.gmra.mxu0 %vm548_vm0, %v2186_v5 }
  0x61   : > { %2115 = vmatmul.msk.bf16.gmra.mxu0 %vm548_vm0, %v2187_v6 }
  0x71   : > { %2116 = vmatmul.msk.bf16.gmra.mxu0 %vm548_vm0, %v2188_v7 }
  0x81   : > { %2117 = vmatmul.msk.bf16.gmra.mxu0 %vm548_vm0, %v2189_v8 }
  0x8e   : > { %v606_v11 = vpop.f32.mrf.mxu0 }
  0x8f   : > { %v607_v12 = vadd.f32 %v2604_v9, %v606_v11 }
  0x91   : > { %v686_v13 = vmax.f32 %v607_v12, 0.0  ;;  %2118 = vmatmul.msk.bf16.gmra.mxu0 %vm548_vm0, %v2190_v10 }
  0x93   : > { %719 = vst.msk [vmem:[#allocation2] sm:$0xff] %vm718_vm1, %v686_v13 }
  0x96   : > { %v608_v14 = vpop.f32.mrf.mxu0 }
  0x97   : > { %v609_v15 = vadd.f32 %v2604_v9, %v608_v14 }
  0x99   : > { %v687_v16 = vmax.f32 %v609_v15, 0.0 }
  0x9b   : > { %720 = vst.msk [vmem:[#allocation2 + $0x8] sm:$0xff] %vm718_vm1, %v687_v16 }
  0x9e   : > { %v611_v18 = vpop.f32.mrf.mxu0 }
  0x9f   : > { %v612_v19 = vadd.f32 %v2604_v9, %v611_v18 }
  0xa1   : > { %v688_v20 = vmax.f32 %v612_v19, 0.0  ;;  %2119 = vmatmul.msk.bf16.gmra.mxu0 %vm548_vm0, %v2191_v17 }
  0xa3   : > { %721 = vst.msk [vmem:[#allocation2 + $0x10] sm:$0xff] %vm718_vm1, %v688_v20 }
  0xa6   : > { %v613_v21 = vpop.f32.mrf.mxu0 }
  0xa7   : > { %v614_v22 = vadd.f32 %v2604_v9, %v613_v21 }
  0xa9   : > { %v689_v23 = vmax.f32 %v614_v22, 0.0 }
  0xab   : > { %722 = vst.msk [vmem:[#allocation2 + $0x18] sm:$0xff] %vm718_vm1, %v689_v23 }
  0xae   : > { %v616_v25 = vpop.f32.mrf.mxu0 }
  0xaf   : > { %v617_v27 = vadd.f32 %v2604_v9, %v616_v25 }
  0xb1   : > { %v690_v28 = vmax.f32 %v617_v27, 0.0  ;;  %2120 = vmatmul.msk.bf16.gmra.mxu0 %vm548_vm0, %v2192_v24 }
  0xb3   : > { %723 = vst.msk [vmem:[#allocation2 + $0x20] sm:$0xff] %vm718_vm1, %v690_v28 }
  0xb6   : > { %v618_v29 = vpop.f32.mrf.mxu0 }
  0xb7   : > { %v619_v30 = vadd.f32 %v2604_v9, %v618_v29 }
  0xb9   : > { %v691_v31 = vmax.f32 %v619_v30, 0.0 }
  0xbb   : > { %724 = vst.msk [vmem:[#allocation2 + $0x28] sm:$0xff] %vm718_vm1, %v691_v31 }
  0xbe   : > { %v621_v33 = vpop.f32.mrf.mxu0 }
  0xbf   : > { %v622_v35 = vadd.f32 %v2604_v9, %v621_v33 }
  0xc1   : > { %v692_v36 = vmax.f32 %v622_v35, 0.0  ;;  %2121 = vmatmul.msk.bf16.gmra.mxu0 %vm548_vm0, %v2193_v32 }
  0xc3   : > { %725 = vst.msk [vmem:[#allocation2 + $0x30] sm:$0xff] %vm718_vm1, %v692_v36 }
  0xc6   : > { %v623_v38 = vpop.f32.mrf.mxu0 }
  0xc7   : > { %v624_v39 = vadd.f32 %v2604_v9, %v623_v38 }
  0xc9   : > { %v693_v40 = vmax.f32 %v624_v39, 0.0 }
  0xca   : > { %v2640_v45 = vld [vmem:[#allocation2 + $0x30] sm:$0xff] }
  0xcb   : > { %726 = vst.msk [vmem:[#allocation2 + $0x38] sm:$0xff] %vm718_vm1, %v693_v40  ;;  %v880_v48 = vrot.slane %v2640_v45, 1 }
  0xce   : > { %v626_v42 = vpop.f32.mrf.mxu0 }
  0xcf   : > { %v627_v44 = vadd.f32 %v2604_v9, %v626_v42 }
  0xd1   : > { %v694_v46 = vmax.f32 %v627_v44, 0.0  ;;  %2122 = vmatmul.msk.bf16.gmra.mxu0 %vm548_vm0, %v2194_v41 }
  0xd2   : > { %v2644_v47 = vld [vmem:[#allocation2 + $0x38] sm:$0xff] }
  0xd3   : > { %727 = vst.msk [vmem:[#allocation2 + $0x40] sm:$0xff] %vm718_vm1, %v694_v46  ;;  %v881_v49 = vrot.slane %v2644_v47, 1 }
  0xd5   : > { %v882_v50 = vsel %vm870_vm2, %v880_v48, %v881_v49  ;;  %v942_v51 = vsel %vm870_vm2, %v881_v49, 0.0 }
  0xd6   : > { %v628_v52 = vpop.f32.mrf.mxu0  ;;  %v2651_v53 = vpack.i.bf16 %v942_v51, %v882_v50 }
  0xd7   : > { %v629_v54 = vadd.f32 %v2604_v9, %v628_v52 }
  0xd8   : > { %2238 = vrot.lane.b32.xlu0 %v2651_v53, %s2505_s19 }
  0xd9   : > { %v695_v55 = vmax.f32 %v629_v54, 0.0 }
  0xda   : > { %v2663_v59 = vld [vmem:[#allocation2 + $0x40] sm:$0xff] }
  0xdb   : > { %728 = vst.msk [vmem:[#allocation2 + $0x48] sm:$0xff] %vm718_vm1, %v695_v55  ;;  %v883_v63 = vrot.slane %v2663_v59, 1 }
  0xde   : > { %v631_v56 = vpop.f32.mrf.mxu0 }
  0xdf   : > { %v632_v58 = vadd.f32 %v2604_v9, %v631_v56 }
  0xe1   : > { %v696_v60 = vmax.f32 %v632_v58, 0.0 }
  0xe2   : > { %v2666_v61 = vld [vmem:[#allocation2 + $0x48] sm:$0xff] }
  0xe3   : > { %729 = vst.msk [vmem:[#allocation2 + $0x50] sm:$0xff] %vm718_vm1, %v696_v60  ;;  %v2242_v62 = vpack.i.bf16 %v2666_v61, %v2663_v59  ;;  %v884_v0 = vrot.slane %v2666_v61, 1 }
  0xe5   : > { %2243 = vrot.lane.b32.xlu0 %v2242_v62, %s2506_s24  ;;  %v885_v1 = vsel %vm870_vm2, %v883_v63, %v884_v0  ;;  %v943_v2 = vsel %vm870_vm2, %v884_v0, 0.0 }
  0xe6   : > { %v633_v3 = vpop.f32.mrf.mxu0  ;;  %v2247_v4 = vpack.i.bf16 %v943_v2, %v885_v1 }
  0xe7   : > { %v634_v5 = vadd.f32 %v2604_v9, %v633_v3 }
  0xe8   : > { %2248 = vrot.lane.b32.xlu1 %v2247_v4, %s2507_s25 }
  0xe9   : > { %v697_v6 = vmax.f32 %v634_v5, 0.0  ;;  %v671_v5 = vpop.f32.mrf.mxu1 }
  0xea   : > { %v2681_v10 = vld [vmem:[#allocation2 + $0x50] sm:$0xff] }
  0xeb   : > { %730 = vst.msk [vmem:[#allocation2 + $0x58] sm:$0xff] %vm718_vm1, %v697_v6  ;;  %v886_v15 = vrot.slane %v2681_v10, 1 }
  0xee   : > { %v636_v7 = vpop.f32.mrf.mxu0 }
  0xef   : > { %v637_v8 = vadd.f32 %v2604_v9, %v636_v7  ;;  %v672_v7 = vadd.f32 %v2604_v9, %v671_v5 }
  0xf0   : > { %2253 = vrot.lane.b32.xlu1 %v2247_v4, %s2505_s19 }
  0xf1   : > { %v698_v11 = vmax.f32 %v637_v8, 0.0 }
  0xf2   : > { %v2683_v12 = vld [vmem:[#allocation2 + $0x58] sm:$0xff] }
  0xf3   : > { %731 = vst.msk [vmem:[#allocation2 + $0x60] sm:$0xff] %vm718_vm1, %v698_v11  ;;  %v887_v13 = vrot.slane %v2683_v12, 1  ;;  %v2257_v14 = vpack.i.bf16 %v2683_v12, %v2681_v10 }
  0xf5   : > { %2258 = vrot.lane.b32.xlu2 %v2257_v14, %s2506_s24  ;;  %v888_v16 = vsel %vm870_vm2, %v886_v15, %v887_v13  ;;  %v944_v17 = vsel %vm870_vm2, %v887_v13, 0.0  ;;  %v712_v13 = vmax.f32 %v672_v7, 0.0 }
  0xf6   : > { %v638_v18 = vpop.f32.mrf.mxu0  ;;  %v2267_v19 = vpack.i.bf16 %v944_v17, %v888_v16 }
  0xf7   : > { %v639_v20 = vadd.f32 %v2604_v9, %v638_v18  ;;  %745 = vst.msk [vmem:[#allocation2 + $0xd0] sm:$0xff] %vm718_vm1, %v712_v13 }
  0xf8   : > { %2268 = vrot.lane.b32.xlu0 %v2267_v19, %s2505_s19 }
  0xf9   : > { %v699_v21 = vmax.f32 %v639_v20, 0.0 }
  0xfa   : > { %v2698_v24 = vld [vmem:[#allocation2 + $0x60] sm:$0xff] }
  0xfb   : > { %732 = vst.msk [vmem:[#allocation2 + $0x68] sm:$0xff] %vm718_vm1, %v699_v21  ;;  %v889_v28 = vrot.slane %v2698_v24, 1  ;;  %v673_v21 = vpop.f32.mrf.mxu1 }
  0xfd   : > { %2263 = vrot.lane.b32.xlu2 %v2267_v19, %s2507_s25 }
  0xfe   : > { %v641_v22 = vpop.f32.mrf.mxu0 }
  0xff   : > { %v642_v23 = vadd.f32 %v2604_v9, %v641_v22 }
 0x101   : > { %v700_v25 = vmax.f32 %v642_v23, 0.0 }
 0x102   : > { %v2700_v26 = vld [vmem:[#allocation2 + $0x68] sm:$0xff] }
 0x103   : > { %733 = vst.msk [vmem:[#allocation2 + $0x70] sm:$0xff] %vm718_vm1, %v700_v25  ;;  %v2272_v27 = vpack.i.bf16 %v2700_v26, %v2698_v24  ;;  %v890_v29 = vrot.slane %v2700_v26, 1  ;;  %v674_v25 = vadd.f32 %v2604_v9, %v673_v21 }
 0x105   : > { %2273 = vrot.lane.b32.xlu1 %v2272_v27, %s2506_s24  ;;  %v891_v30 = vsel %vm870_vm2, %v889_v28, %v890_v29  ;;  %v945_v31 = vsel %vm870_vm2, %v890_v29, 0.0  ;;  %v713_v28 = vmax.f32 %v674_v25, 0.0 }
 0x106   : > { %v643_v32 = vpop.f32.mrf.mxu0  ;;  %v2277_v33 = vpack.i.bf16 %v945_v31, %v891_v30  ;;  %v676_v30 = vpop.f32.mrf.mxu1  ;;  %v2201_v31 = vld [vmem:[%s3249_s4] sm:$0xff] }
 0x107   : > { %v644_v34 = vadd.f32 %v2604_v9, %v643_v32  ;;  %746 = vst.msk [vmem:[#allocation2 + $0xd8] sm:$0xff] %vm718_vm1, %v713_v28  ;;  %2204 = vmatpush.bf16.msra.mxu2 %v2201_v31  ;;  %1538 = vmatpush.bf16.msra.mxu1 %v2201_v31 }
 0x108   : > { %2278 = vrot.lane.b32.xlu2 %v2277_v33, %s2507_s25  ;;  %2283 = vrot.lane.b32.xlu0 %v2277_v33, %s2505_s19  ;;  %v677_v33 = vadd.f32 %v2604_v9, %v676_v30 }
 0x109   : > { %v701_v35 = vmax.f32 %v644_v34, 0.0 }
 0x10a   : > { %v2715_v38 = vld [vmem:[#allocation2 + $0x70] sm:$0xff] }
 0x10b   : > { %734 = vst.msk [vmem:[#allocation2 + $0x78] sm:$0xff] %vm718_vm1, %v701_v35  ;;  %v892_v42 = vrot.slane %v2715_v38, 1 }
 0x10e   : > { %v646_v36 = vpop.f32.mrf.mxu0 }
 0x10f   : > { %v647_v37 = vadd.f32 %v2604_v9, %v646_v36  ;;  %v714_v36 = vmax.f32 %v677_v33, 0.0 }
 0x111   : > { %v702_v39 = vmax.f32 %v647_v37, 0.0  ;;  %747 = vst.msk [vmem:[#allocation2 + $0xe0] sm:$0xff] %vm718_vm1, %v714_v36 }
 0x112   : > { %v2717_v40 = vld [vmem:[#allocation2 + $0x78] sm:$0xff] }
 0x113   : > { %735 = vst.msk [vmem:[#allocation2 + $0x80] sm:$0xff] %vm718_vm1, %v702_v39  ;;  %v2287_v41 = vpack.i.bf16 %v2717_v40, %v2715_v38  ;;  %v893_v43 = vrot.slane %v2717_v40, 1 }
 0x115   : > { %2288 = vrot.lane.b32.xlu1 %v2287_v41, %s2506_s24  ;;  %v894_v44 = vsel %vm870_vm2, %v892_v42, %v893_v43  ;;  %v946_v46 = vsel %vm870_vm2, %v893_v43, 0.0 }
 0x116   : > { %v648_v48 = vpop.f32.mrf.mxu0  ;;  %v2292_v49 = vpack.i.bf16 %v946_v46, %v894_v44 }
 0x117   : > { %v649_v50 = vadd.f32 %v2604_v9, %v648_v48  ;;  %v678_v48 = vpop.f32.mrf.mxu1 }
 0x118   : > { %2293 = vrot.lane.b32.xlu2 %v2292_v49, %s2507_s25  ;;  %2298 = vrot.lane.b32.xlu0 %v2292_v49, %s2505_s19 }
 0x119   : > { %v703_v51 = vmax.f32 %v649_v50, 0.0 }
 0x11a   : > { %v2732_v55 = vld [vmem:[#allocation2 + $0x80] sm:$0xff] }
 0x11b   : > { %736 = vst.msk [vmem:[#allocation2 + $0x88] sm:$0xff] %vm718_vm1, %v703_v51  ;;  %v895_v60 = vrot.slane %v2732_v55, 1  ;;  %v679_v51 = vadd.f32 %v2604_v9, %v678_v48  ;;  %v2825_v48 = vld [vmem:[#allocation2 + $0xd0] sm:$0xff] }
 0x11e   : > { %v651_v52 = vpop.f32.mrf.mxu0 }
 0x11f   : > { %v652_v54 = vadd.f32 %v2604_v9, %v651_v52 }
 0x121   : > { %v704_v56 = vmax.f32 %v652_v54, 0.0  ;;  %v715_v54 = vmax.f32 %v679_v51, 0.0 }
 0x122   : > { %v2734_v57 = vld [vmem:[#allocation2 + $0x88] sm:$0xff] }
 0x123   : > { %737 = vst.msk [vmem:[#allocation2 + $0x90] sm:$0xff] %vm718_vm1, %v704_v56  ;;  %v2302_v58 = vpack.i.bf16 %v2734_v57, %v2732_v55  ;;  %v896_v62 = vrot.slane %v2734_v57, 1 }
 0x124   : > { %748 = vst.msk [vmem:[#allocation2 + $0xe8] sm:$0xff] %vm718_vm1, %v715_v54 }
 0x125   : > { %2303 = vrot.lane.b32.xlu1 %v2302_v58, %s2506_s24  ;;  %v897_v63 = vsel %vm870_vm2, %v895_v60, %v896_v62  ;;  %v947_v0 = vsel %vm870_vm2, %v896_v62, 0.0  ;;  %v681_v58 = vpop.f32.mrf.mxu1 }
 0x126   : > { %v653_v1 = vpop.f32.mrf.mxu0  ;;  %v2307_v2 = vpack.i.bf16 %v947_v0, %v897_v63  ;;  %v682_v62 = vadd.f32 %v2604_v9, %v681_v58 }
 0x127   : > { %v654_v3 = vadd.f32 %v2604_v9, %v653_v1 }
 0x128   : > { %2308 = vrot.lane.b32.xlu2 %v2307_v2, %s2507_s25  ;;  %2313 = vrot.lane.b32.xlu0 %v2307_v2, %s2505_s19  ;;  %v716_v2 = vmax.f32 %v682_v62, 0.0 }
 0x129   : > { %v705_v4 = vmax.f32 %v654_v3, 0.0 }
 0x12a   : > { %v2750_v11 = vld [vmem:[#allocation2 + $0x90] sm:$0xff]  ;;  %749 = vst.msk [vmem:[#allocation2 + $0xf0] sm:$0xff] %vm718_vm1, %v716_v2 }
 0x12b   : > { %738 = vst.msk [vmem:[#allocation2 + $0x98] sm:$0xff] %vm718_vm1, %v705_v4  ;;  %v898_v17 = vrot.slane %v2750_v11, 1 }
 0x12e   : > { %v656_v6 = vpop.f32.mrf.mxu0 }
 0x12f   : > { %v657_v8 = vadd.f32 %v2604_v9, %v656_v6 }
 0x131   : > { %v706_v14 = vmax.f32 %v657_v8, 0.0 }
 0x132   : > { %v2752_v15 = vld [vmem:[#allocation2 + $0x98] sm:$0xff] }
 0x133   : > { %739 = vst.msk [vmem:[#allocation2 + $0xa0] sm:$0xff] %vm718_vm1, %v706_v14  ;;  %v2317_v16 = vpack.i.bf16 %v2752_v15, %v2750_v11  ;;  %v899_v18 = vrot.slane %v2752_v15, 1  ;;  %v683_v14 = vpop.f32.mrf.mxu1 }
 0x135   : > { %2318 = vrot.lane.b32.xlu1 %v2317_v16, %s2506_s24  ;;  %v900_v19 = vsel %vm870_vm2, %v898_v17, %v899_v18  ;;  %v948_v20 = vsel %vm870_vm2, %v899_v18, 0.0  ;;  %v684_v18 = vadd.f32 %v2604_v9, %v683_v14 }
 0x136   : > { %v658_v22 = vpop.f32.mrf.mxu0  ;;  %v2322_v23 = vpack.i.bf16 %v948_v20, %v900_v19 }
 0x137   : > { %v659_v27 = vadd.f32 %v2604_v9, %v658_v22 }
 0x138   : > { %2323 = vrot.lane.b32.xlu2 %v2322_v23, %s2507_s25  ;;  %2328 = vrot.lane.b32.xlu0 %v2322_v23, %s2505_s19 }
 0x139   : > { %v707_v29 = vmax.f32 %v659_v27, 0.0 }
 0x13a   : > { %v2774_v35 = vld [vmem:[#allocation2 + $0xa0] sm:$0xff] }
 0x13b   : > { %740 = vst.msk [vmem:[#allocation2 + $0xa8] sm:$0xff] %vm718_vm1, %v707_v29  ;;  %v901_v42 = vrot.slane %v2774_v35, 1  ;;  %v717_v29 = vmax.f32 %v684_v18, 0.0 }
 0x13d   : > { %750 = vst.msk [vmem:[#allocation2 + $0xf8] sm:$0xff] %vm718_vm1, %v717_v29 }
 0x13e   : > { %v661_v32 = vpop.f32.mrf.mxu0 }
 0x13f   : > { %v662_v34 = vadd.f32 %v2604_v9, %v661_v32 }
 0x141   : > { %v708_v37 = vmax.f32 %v662_v34, 0.0 }
 0x142   : > { %v2776_v39 = vld [vmem:[#allocation2 + $0xa8] sm:$0xff] }
 0x143   : > { %741 = vst.msk [vmem:[#allocation2 + $0xb0] sm:$0xff] %vm718_vm1, %v708_v37  ;;  %v2332_v41 = vpack.i.bf16 %v2776_v39, %v2774_v35  ;;  %v902_v43 = vrot.slane %v2776_v39, 1 }
 0x145   : > { %2333 = vrot.lane.b32.xlu1 %v2332_v41, %s2506_s24  ;;  %v903_v44 = vsel %vm870_vm2, %v901_v42, %v902_v43  ;;  %v949_v46 = vsel %vm870_vm2, %v902_v43, 0.0  ;;  %v2478_v42 = vld [vmem:[%s3248_s3] ss:$0 sm:$0xff]  ;;  %v782_v43 = vpop.f32.mrf.mxu1 }
 0x146   : > { %v663_v49 = vpop.f32.mrf.mxu0  ;;  %v2337_v50 = vpack.i.bf16 %v949_v46, %v903_v44 }
 0x147   : > { %v664_v52 = vadd.f32 %v2604_v9, %v663_v49  ;;  %v783_v49 = vadd.f32 %v2478_v42, %v782_v43 }
 0x148   : > { %2338 = vrot.lane.b32.xlu2 %v2337_v50, %s2507_s25  ;;  %2343 = vrot.lane.b32.xlu0 %v2337_v50, %s2505_s19 }
 0x149   : > { %v709_v56 = vmax.f32 %v664_v52, 0.0  ;;  %v2827_v52 = vld [vmem:[#allocation2 + $0xd8] sm:$0xff] }
 0x14a   : > { %v2239_v63 = vpop.permute.xlu0 %2238  ;;  %v2795_v1 = vld [vmem:[#allocation2 + $0xb0] sm:$0xff] }
 0x14b   : > { %742 = vst.msk [vmem:[#allocation2 + $0xb8] sm:$0xff] %vm718_vm1, %v709_v56  ;;  %v904_v6 = vrot.slane %v2795_v1, 1  ;;  %v2241_v19 = vunpack.i.h.bf16 %v2239_v63  ;;  %v2240_v20 = vunpack.i.l.bf16 %v2239_v63  ;;  %v787_v56 = vmax.f32 %v783_v49, 0.0 }
 0x14d   : > { %v1268_v31 = vsel %vm718_vm1, %v2644_v47, %v2241_v19  ;;  %v1267_v32 = vsel %vm718_vm1, %v2640_v45, %v2240_v20  ;;  %790 = vst.msk [vmem:[#allocation2 + $0x100] sm:$0xff] %vm718_vm1, %v787_v56 }
 0x14e   : > { %v666_v60 = vpop.f32.mrf.mxu0 }
 0x14f   : > { %v667_v0 = vadd.f32 %v2604_v9, %v666_v60  ;;  %v2259_v23 = vpop.permute.xlu2 %2258 }
 0x150   : > { %v2261_v2 = vunpack.i.h.bf16 %v2259_v23 }
 0x151   : > { %v710_v3 = vmax.f32 %v667_v0, 0.0  ;;  %v910_v0 = vrot.slane %v2825_v48, 1 }
 0x152   : > { %v2797_v4 = vld [vmem:[#allocation2 + $0xb8] sm:$0xff] }
 0x153   : > { %743 = vst.msk [vmem:[#allocation2 + $0xc0] sm:$0xff] %vm718_vm1, %v710_v3  ;;  %v2347_v5 = vpack.i.bf16 %v2797_v4, %v2795_v1  ;;  %v905_v7 = vrot.slane %v2797_v4, 1 }
 0x155   : > { %2348 = vrot.lane.b32.xlu1 %v2347_v5, %s2506_s24  ;;  %v906_v8 = vsel %vm870_vm2, %v904_v6, %v905_v7  ;;  %v950_v13 = vsel %vm870_vm2, %v905_v7, 0.0  ;;  %v911_v6 = vrot.slane %v2827_v52, 1  ;;  %v2260_v7 = vunpack.i.l.bf16 %v2259_v23 }
 0x156   : > { %v668_v16 = vpop.f32.mrf.mxu0  ;;  %v2352_v17 = vpack.i.bf16 %v950_v13, %v906_v8 }
 0x157   : > { %v669_v21 = vadd.f32 %v2604_v9, %v668_v16  ;;  %v2244_v22 = vpop.permute.xlu0 %2243  ;;  %v2264_v58 = vpop.permute.xlu2 %2263  ;;  %v2508_v16 = vmov 0.0  }
 0x158   : > { %v2246_v25 = vunpack.i.h.bf16 %v2244_v22  ;;  %v2245_v27 = vunpack.i.l.bf16 %v2244_v22  ;;  %2353 = vrot.lane.b32.xlu2 %v2352_v17, %s2507_s25  ;;  %2358 = vrot.lane.b32.xlu0 %v2352_v17, %s2505_s19  ;;  %2135 = vst.msk [vmem:[#allocation2 + $0x100] sm:$0xff] %vm718_vm1, %v2508_v16  ;;  %v2266_v17 = vunpack.i.h.bf16 %v2264_v58  ;;  %v2265_v18 = vunpack.i.l.bf16 %v2264_v58 }
 0x159   : > { %v711_v28 = vmax.f32 %v669_v21, 0.0  ;;  %v784_v21 = vpop.f32.mrf.mxu1 }
 0x15a   : > { %v2249_v30 = vpop.permute.xlu1 %2248  ;;  %v1300_v34 = vsel %vm1293_vm3, %v1267_v32, %v2245_v27  ;;  %v1301_v36 = vsel %vm1293_vm3, %v1268_v31, %v2246_v25  ;;  %v2829_v54 = vld [vmem:[#allocation2 + $0xc0] sm:$0xff]  ;;  %v912_v31 = vsel %vm870_vm2, %v910_v0, %v911_v6  ;;  %v952_v32 = vsel %vm870_vm2, %v911_v6, 0.0 }
 0x15b   : > { %744 = vst.msk [vmem:[#allocation2 + $0xc8] sm:$0xff] %vm718_vm1, %v711_v28  ;;  %v2251_v9 = vunpack.i.h.bf16 %v2249_v30  ;;  %v2250_v33 = vunpack.i.l.bf16 %v2249_v30  ;;  %v907_v13 = vrot.slane %v2829_v54, 1 }
 0x15d   : > { %v1333_v37 = vsel %vm1326_vm4, %v1300_v34, %v2250_v33  ;;  %v1334_v41 = vsel %vm1326_vm4, %v1301_v36, %v2251_v9  ;;  %v2859_v36 = vld [vmem:[#allocation2 + $0xe0] sm:$0xff] }
 0x15e   : > { %v1365_v44 = vpack.c.bf16 %v1333_v37, %v1333_v37  ;;  %v1366_v46 = vpack.c.bf16 %v1334_v41, %v1334_v41  ;;  %v2861_v37 = vld [vmem:[#allocation2 + $0xe8] sm:$0xff]  ;;  %v2382_v41 = vpack.i.bf16 %v952_v32, %v912_v31  ;;  %v2902_v31 = vld [vmem:[#allocation2 + $0xf0] sm:$0xff] }
 0x15f   : > { %v914_v49 = vrot.slane %v2861_v37, 1 }
 0x160   : > { %v1435_v50 = vunpack.c.l.b16 %v1365_v44  ;;  %v1436_v51 = vunpack.c.l.b16 %v1366_v46  ;;  %v913_v46 = vrot.slane %v2859_v36, 1 }
 0x162   : > { %v2254_v60 = vpop.permute.xlu1 %2253  ;;  %v1464_v62 = vpack.c.b16 %v1436_v51, %v1435_v50  ;;  %v2831_v63 = vld [vmem:[#allocation2 + $0xc8] sm:$0xff]  ;;  %v2870_v50 = vld [vmem:[#allocation2] sm:$0xff]  ;;  %v915_v0 = vsel %vm870_vm2, %v913_v46, %v914_v49 }
 0x163   : > { %v2256_v3 = vunpack.i.h.bf16 %v2254_v60  ;;  %v2255_v5 = vunpack.i.l.bf16 %v2254_v60  ;;  %v2362_v8 = vpack.i.bf16 %v2831_v63, %v2829_v54  ;;  %v908_v14 = vrot.slane %v2831_v63, 1 }
 0x164   : > { %2144 = vmatmul.msk.bf16.vlgmr.msra.gmra.mxu2 %vm548_vm0, %v1464_v62  ;;  %v871_v56 = vrot.slane %v2870_v50, 1  ;;  %v2392_v62 = vpack.i.bf16 %v2861_v37, %v2859_v36 }
 0x165   : > { %v1270_v19 = vsel %vm718_vm1, %v2666_v61, %v2256_v3  ;;  %v1269_v20 = vsel %vm718_vm1, %v2663_v59, %v2255_v5  ;;  %2363 = vrot.lane.b32.xlu1 %v2362_v8, %s2506_s24  ;;  %v909_v25 = vsel %vm870_vm2, %v907_v13, %v908_v14  ;;  %v951_v27 = vsel %vm870_vm2, %v908_v14, 0.0  ;;  %v2883_v13 = vld [vmem:[#allocation2 + $0x18] sm:$0xff]  ;;  %v2279_v14 = vpop.permute.xlu2 %2278 }
 0x166   : > { %v1303_v22 = vsel %vm1293_vm3, %v1270_v19, %v2261_v2  ;;  %v1302_v23 = vsel %vm1293_vm3, %v1269_v20, %v2260_v7  ;;  %v2367_v28 = vpack.i.bf16 %v951_v27, %v909_v25  ;;  %v785_v61 = vadd.f32 %v2478_v42, %v784_v21  ;;  %v2864_v42 = vld [vmem:[#allocation2 + $0x8] sm:$0xff] }
 0x167   : > { %v1335_v29 = vsel %vm1326_vm4, %v1302_v23, %v2265_v18  ;;  %v1336_v30 = vsel %vm1326_vm4, %v1303_v22, %v2266_v17  ;;  %v2377_v59 = vpack.i.bf16 %v2827_v52, %v2825_v48  ;;  %v872_v51 = vrot.slane %v2864_v42, 1  ;;  %v2886_v18 = vld [vmem:[#allocation2 + $0x10] sm:$0xff] }
 0x168   : > { %2368 = vrot.lane.b32.xlu2 %v2367_v28, %s2507_s25  ;;  %2373 = vrot.lane.b32.xlu0 %v2367_v28, %s2505_s19  ;;  %v1367_v9 = vpack.c.bf16 %v1335_v29, %v1335_v29  ;;  %v1368_v33 = vpack.c.bf16 %v1336_v30, %v1336_v30  ;;  %v788_v34 = vmax.f32 %v785_v61, 0.0  ;;  %v953_v2 = vsel %vm870_vm2, %v914_v49, 0.0 }
 0x169   : > { %v873_v3 = vsel %vm870_vm2, %v871_v56, %v872_v51  ;;  %v939_v5 = vsel %vm870_vm2, %v872_v51, 0.0  ;;  %v2397_v8 = vpack.i.bf16 %v953_v2, %v915_v0  ;;  %v875_v21 = vrot.slane %v2883_v13, 1 }
 0x16a   : > { %791 = vst.msk [vmem:[#allocation2 + $0x108] sm:$0xff] %vm718_vm1, %v788_v34  ;;  %v1437_v43 = vunpack.c.l.b16 %v1367_v9  ;;  %v1438_v44 = vunpack.c.l.b16 %v1368_v33  ;;  %v2269_v58 = vpop.permute.xlu0 %2268  ;;  %v2402_v17 = vpack.i.bf16 %v939_v5, %v873_v3  ;;  %v2281_v22 = vunpack.i.h.bf16 %v2279_v14  ;;  %v2918_v5 = vld [vmem:[#allocation2 + $0x28] sm:$0xff] }
 0x16b   : > { %2136 = vst.msk [vmem:[#allocation2 + $0x108] sm:$0xff] %vm718_vm1, %v2508_v16  ;;  %v2271_v6 = vunpack.i.h.bf16 %v2269_v58  ;;  %v2270_v7 = vunpack.i.l.bf16 %v2269_v58  ;;  %v2280_v23 = vunpack.i.l.bf16 %v2279_v14  ;;  %v874_v30 = vrot.slane %v2886_v18, 1 }
 0x16c   : > { %v1465_v60 = vpack.c.b16 %v1438_v44, %v1437_v43  ;;  %v2407_v61 = vpack.i.bf16 %v2883_v13, %v2886_v18  ;;  %v940_v9 = vsel %vm870_vm2, %v875_v21, 0.0  ;;  %v916_v44 = vrot.slane %v2902_v31, 1 }
 0x16d   : > { %2378 = vrot.lane.b32.xlu1 %v2377_v59, %s2506_s24  ;;  %v1272_v25 = vsel %vm718_vm1, %v2683_v12, %v2271_v6  ;;  %v1271_v27 = vsel %vm718_vm1, %v2681_v10, %v2270_v7  ;;  %v2904_v10 = vld [vmem:[#allocation2 + $0xf8] sm:$0xff]  ;;  %v876_v32 = vsel %vm870_vm2, %v874_v30, %v875_v21  ;;  %v834_v30 = vld [vmem:[#allocation2 + $0x100] sm:$0xff] }
 0x16e   : > { %v917_v46 = vrot.slane %v2904_v10, 1  ;;  %v2412_v49 = vpack.i.bf16 %v940_v9, %v876_v32  ;;  %v2422_v58 = vpack.i.bf16 %v2904_v10, %v2902_v31 }
 0x170   : > { %2383 = vrot.lane.b32.xlu2 %v2382_v41, %s2507_s25  ;;  %2388 = vrot.lane.b32.xlu0 %v2382_v41, %s2505_s19 }
 0x172   : > { %v2294_v6 = vpop.permute.xlu2 %2293 }
 0x174   : > { %2145 = vmatmul.msk.bf16.gmra.mxu2 %vm548_vm0, %v1465_v60  ;;  %v918_v60 = vsel %vm870_vm2, %v916_v44, %v917_v46 }
 0x175   : > { %2393 = vrot.lane.b32.xlu1 %v2392_v62, %s2506_s24  ;;  %v954_v62 = vsel %vm870_vm2, %v917_v46, 0.0 }
 0x176   : > { %v2427_v3 = vpack.i.bf16 %v954_v62, %v918_v60 }
 0x177   : > { %v2274_v16 = vpop.permute.xlu1 %2273 }
 0x178   : > { %v2276_v19 = vunpack.i.h.bf16 %v2274_v16  ;;  %v2275_v20 = vunpack.i.l.bf16 %v2274_v16  ;;  %2398 = vrot.lane.b32.xlu2 %v2397_v8, %s2507_s25  ;;  %2403 = vrot.lane.b32.xlu0 %v2402_v17, %s2505_s19  ;;  %v878_v17 = vrot.slane %v2918_v5, 1 }
 0x17a   : > { %v1304_v28 = vsel %vm1293_vm3, %v1271_v27, %v2275_v20  ;;  %v1305_v29 = vsel %vm1293_vm3, %v1272_v25, %v2276_v19  ;;  %v2284_v51 = vpop.permute.xlu0 %2283  ;;  %v2296_v19 = vunpack.i.h.bf16 %v2294_v6  ;;  %v2295_v20 = vunpack.i.l.bf16 %v2294_v6 }
 0x17b   : > { %v1337_v59 = vsel %vm1326_vm4, %v1304_v28, %v2280_v23  ;;  %v1338_v12 = vsel %vm1326_vm4, %v1305_v29, %v2281_v22  ;;  %v2286_v0 = vunpack.i.h.bf16 %v2284_v51  ;;  %v2285_v2 = vunpack.i.l.bf16 %v2284_v51 }
 0x17c   : > { %v1369_v33 = vpack.c.bf16 %v1337_v59, %v1337_v59  ;;  %v1370_v34 = vpack.c.bf16 %v1338_v12, %v1338_v12  ;;  %v941_v59 = vsel %vm870_vm2, %v878_v17, 0.0 }
 0x17d   : > { %2408 = vrot.lane.b32.xlu1 %v2407_v61, %s2506_s24  ;;  %v1274_v21 = vsel %vm718_vm1, %v2700_v26, %v2286_v0  ;;  %v1273_v22 = vsel %vm718_vm1, %v2698_v24, %v2285_v2  ;;  %v835_v61 = vld [vmem:[#allocation2 + $0x108] sm:$0xff] }
 0x17e   : > { %v1439_v41 = vunpack.c.l.b16 %v1369_v33  ;;  %v1440_v43 = vunpack.c.l.b16 %v1370_v34  ;;  %v920_v34 = vrot.slane %v835_v61, 1 }
 0x180   : > { %2413 = vrot.lane.b32.xlu2 %v2412_v49, %s2507_s25  ;;  %2418 = vrot.lane.b32.xlu0 %v2397_v8, %s2505_s19  ;;  %v1466_v56 = vpack.c.b16 %v1440_v43, %v1439_v41  ;;  %v2921_v8 = vld [vmem:[#allocation2 + $0x20] sm:$0xff]  ;;  %v919_v41 = vrot.slane %v834_v30, 1 }
 0x181   : > { %v877_v27 = vrot.slane %v2921_v8, 1  ;;  %v2437_v28 = vpack.i.bf16 %v2918_v5, %v2921_v8 }
 0x182   : > { %v921_v51 = vsel %vm870_vm2, %v919_v41, %v920_v34  ;;  %v2309_v0 = vpop.permute.xlu2 %2308 }
 0x183   : > { %v879_v24 = vsel %vm870_vm2, %v877_v27, %v878_v17 }
 0x184   : > { %2146 = vmatmul.msk.bf16.gmra.mxu2 %vm548_vm0, %v1466_v56  ;;  %v2442_v43 = vpack.i.bf16 %v941_v59, %v879_v24  ;;  %v955_v56 = vsel %vm870_vm2, %v920_v34, 0.0 }
 0x185   : > { %2423 = vrot.lane.b32.xlu1 %v2422_v58, %s2506_s24  ;;  %v2457_v62 = vpack.i.bf16 %v955_v56, %v921_v51 }
 0x187   : > { %v2289_v7 = vpop.permute.xlu1 %2288 }
 0x188   : > { %v2291_v14 = vunpack.i.h.bf16 %v2289_v7  ;;  %v2290_v16 = vunpack.i.l.bf16 %v2289_v7  ;;  %2428 = vrot.lane.b32.xlu2 %v2427_v3, %s2507_s25  ;;  %2433 = vrot.lane.b32.xlu0 %v2412_v49, %s2505_s19  ;;  %v2452_v49 = vpack.i.bf16 %v835_v61, %v834_v30 }
 0x18a   : > { %v1306_v23 = vsel %vm1293_vm3, %v1273_v22, %v2290_v16  ;;  %v1307_v25 = vsel %vm1293_vm3, %v1274_v21, %v2291_v14  ;;  %v2299_v44 = vpop.permute.xlu0 %2298  ;;  %v2311_v14 = vunpack.i.h.bf16 %v2309_v0 }
 0x18b   : > { %v1339_v29 = vsel %vm1326_vm4, %v1306_v23, %v2295_v20  ;;  %v1340_v26 = vsel %vm1326_vm4, %v1307_v25, %v2296_v19  ;;  %v2301_v58 = vunpack.i.h.bf16 %v2299_v44  ;;  %v2300_v60 = vunpack.i.l.bf16 %v2299_v44 }
 0x18c   : > { %v1371_v12 = vpack.c.bf16 %v1339_v29, %v1339_v29  ;;  %v1372_v32 = vpack.c.bf16 %v1340_v26, %v1340_v26  ;;  %v2467_v23 = vpack.i.bf16 %v2644_v47, %v2640_v45 }
 0x18d   : > { %2438 = vrot.lane.b32.xlu1 %v2437_v28, %s2506_s24  ;;  %v1276_v16 = vsel %vm718_vm1, %v2717_v40, %v2301_v58  ;;  %v1275_v17 = vsel %vm718_vm1, %v2715_v38, %v2300_v60 }
 0x18e   : > { %v1441_v9 = vunpack.c.l.b16 %v1371_v12  ;;  %v1442_v33 = vunpack.c.l.b16 %v1372_v32 }
 0x190   : > { %2443 = vrot.lane.b32.xlu2 %v2442_v43, %s2507_s25  ;;  %2448 = vrot.lane.b32.xlu0 %v2427_v3, %s2505_s19  ;;  %v1467_v46 = vpack.c.b16 %v1442_v33, %v1441_v9  ;;  %v2310_v3 = vunpack.i.l.bf16 %v2309_v0 }
 0x192   : > { %v2324_v61 = vpop.permute.xlu2 %2323 }
 0x193   : > { %v2326_v45 = vunpack.i.h.bf16 %v2324_v61  ;;  %v2325_v47 = vunpack.i.l.bf16 %v2324_v61 }
 0x194   : > { %2147 = vmatmul.msk.bf16.gmra.mxu2 %vm548_vm0, %v1467_v46 }
 0x195   : > { %2453 = vrot.lane.b32.xlu1 %v2452_v49, %s2506_s24 }
 0x197   : > { %v2304_v2 = vpop.permute.xlu1 %2303 }
 0x198   : > { %v2306_v6 = vunpack.i.h.bf16 %v2304_v2  ;;  %v2305_v7 = vunpack.i.l.bf16 %v2304_v2  ;;  %2458 = vrot.lane.b32.xlu2 %v2457_v62, %s2507_s25  ;;  %2463 = vrot.lane.b32.xlu0 %v2442_v43, %s2505_s19 }
 0x19a   : > { %v1308_v19 = vsel %vm1293_vm3, %v1275_v17, %v2305_v7  ;;  %v1309_v20 = vsel %vm1293_vm3, %v1276_v16, %v2306_v6  ;;  %v2314_v28 = vpop.permute.xlu0 %2313 }
 0x19b   : > { %v1341_v21 = vsel %vm1326_vm4, %v1308_v19, %v2310_v3  ;;  %v1342_v22 = vsel %vm1326_vm4, %v1309_v20, %v2311_v14  ;;  %v2316_v26 = vunpack.i.h.bf16 %v2314_v28  ;;  %v2315_v30 = vunpack.i.l.bf16 %v2314_v28 }
 0x19c   : > { %v1373_v25 = vpack.c.bf16 %v1341_v21, %v1341_v21  ;;  %v1374_v40 = vpack.c.bf16 %v1342_v22, %v1342_v22 }
 0x19d   : > { %2468 = vrot.lane.b32.xlu1 %v2467_v23, %s2506_s24  ;;  %v1278_v32 = vsel %vm718_vm1, %v2734_v57, %v2316_v26  ;;  %v1277_v9 = vsel %vm718_vm1, %v2732_v55, %v2315_v30 }
 0x19e   : > { %v1443_v38 = vunpack.c.l.b16 %v1373_v25  ;;  %v1444_v27 = vunpack.c.l.b16 %v1374_v40 }
 0x1a0   : > { %2473 = vrot.lane.b32.xlu2 %v2651_v53, %s2507_s25  ;;  %v1468_v29 = vpack.c.b16 %v1444_v27, %v1443_v38 }
 0x1a2   : > { %v2339_v60 = vpop.permute.xlu2 %2338 }
 0x1a3   : > { %v2341_v2 = vunpack.i.h.bf16 %v2339_v60  ;;  %v2340_v6 = vunpack.i.l.bf16 %v2339_v60 }
 0x1a4   : > { %2148 = vmatmul.msk.bf16.gmra.mxu2 %vm548_vm0, %v1468_v29 }
 0x1a7   : > { %v2319_v24 = vpop.permute.xlu1 %2318 }
 0x1a8   : > { %v2321_v59 = vunpack.i.h.bf16 %v2319_v24  ;;  %v2320_v12 = vunpack.i.l.bf16 %v2319_v24 }
 0x1aa   : > { %v1310_v53 = vsel %vm1293_vm3, %v1277_v9, %v2320_v12  ;;  %v1311_v33 = vsel %vm1293_vm3, %v1278_v32, %v2321_v59  ;;  %v2329_v51 = vpop.permute.xlu0 %2328 }
 0x1ab   : > { %v1343_v34 = vsel %vm1326_vm4, %v1310_v53, %v2325_v47  ;;  %v1344_v41 = vsel %vm1326_vm4, %v1311_v33, %v2326_v45  ;;  %v2331_v57 = vunpack.i.h.bf16 %v2329_v51  ;;  %v2330_v58 = vunpack.i.l.bf16 %v2329_v51 }
 0x1ac   : > { %v1375_v43 = vpack.c.bf16 %v1343_v34, %v1343_v34  ;;  %v1376_v44 = vpack.c.bf16 %v1344_v41, %v1344_v41 }
 0x1ad   : > { %v1280_v7 = vsel %vm718_vm1, %v2752_v15, %v2331_v57  ;;  %v1279_v14 = vsel %vm718_vm1, %v2750_v11, %v2330_v58 }
 0x1ae   : > { %v1445_v46 = vunpack.c.l.b16 %v1375_v43  ;;  %v1446_v49 = vunpack.c.l.b16 %v1376_v44 }
 0x1b0   : > { %v1469_v56 = vpack.c.b16 %v1446_v49, %v1445_v46 }
 0x1b2   : > { %v2354_v25 = vpop.permute.xlu2 %2353 }
 0x1b3   : > { %v2356_v30 = vunpack.i.h.bf16 %v2354_v25  ;;  %v2355_v61 = vunpack.i.l.bf16 %v2354_v25 }
 0x1b4   : > { %2149 = vmatmul.msk.bf16.gmra.mxu2 %vm548_vm0, %v1469_v56 }
 0x1b7   : > { %v2334_v55 = vpop.permute.xlu1 %2333 }
 0x1b8   : > { %v2336_v62 = vunpack.i.h.bf16 %v2334_v55  ;;  %v2335_v0 = vunpack.i.l.bf16 %v2334_v55 }
 0x1ba   : > { %v1312_v3 = vsel %vm1293_vm3, %v1279_v14, %v2335_v0  ;;  %v1313_v16 = vsel %vm1293_vm3, %v1280_v7, %v2336_v62  ;;  %v2344_v40 = vpop.permute.xlu0 %2343 }
 0x1bb   : > { %v1345_v17 = vsel %vm1326_vm4, %v1312_v3, %v2340_v6  ;;  %v1346_v19 = vsel %vm1326_vm4, %v1313_v16, %v2341_v2  ;;  %v2346_v15 = vunpack.i.h.bf16 %v2344_v40  ;;  %v2345_v27 = vunpack.i.l.bf16 %v2344_v40 }
 0x1bc   : > { %v1377_v20 = vpack.c.bf16 %v1345_v17, %v1345_v17  ;;  %v1378_v21 = vpack.c.bf16 %v1346_v19, %v1346_v19 }
 0x1bd   : > { %v1282_v24 = vsel %vm718_vm1, %v2776_v39, %v2346_v15  ;;  %v1281_v59 = vsel %vm718_vm1, %v2774_v35, %v2345_v27  ;;  %v2202_v39 = vld [vmem:[%s3251_s6] sm:$0xff] }
 0x1be   : > { %v1447_v22 = vunpack.c.l.b16 %v1377_v20  ;;  %v1448_v23 = vunpack.c.l.b16 %v1378_v21  ;;  %2205 = vmatpush.bf16.msra.mxu3 %v2202_v39  ;;  %1735 = vmatpush.bf16.msrb.mxu1 %v2202_v39 }
 0x1c0   : > { %v1470_v38 = vpack.c.b16 %v1448_v23, %v1447_v22 }
 0x1c2   : > { %v2369_v11 = vpop.permute.xlu2 %2368 }
 0x1c3   : > { %v2371_v60 = vunpack.i.h.bf16 %v2369_v11  ;;  %v2370_v55 = vunpack.i.l.bf16 %v2369_v11 }
 0x1c4   : > { %2150 = vmatmul.msk.bf16.gmra.mxu2 %vm548_vm0, %v1470_v38 }
 0x1c7   : > { %v2349_v28 = vpop.permute.xlu1 %2348 }
 0x1c8   : > { %v2351_v29 = vunpack.i.h.bf16 %v2349_v28  ;;  %v2350_v26 = vunpack.i.l.bf16 %v2349_v28 }
 0x1ca   : > { %v1314_v12 = vsel %vm1293_vm3, %v1281_v59, %v2350_v26  ;;  %v1315_v45 = vsel %vm1293_vm3, %v1282_v24, %v2351_v29  ;;  %v2384_v41 = vpop.permute.xlu2 %2383  ;;  %v2359_v44 = vpop.permute.xlu0 %2358 }
 0x1cb   : > { %v1347_v47 = vsel %vm1326_vm4, %v1314_v12, %v2355_v61  ;;  %v1348_v32 = vsel %vm1326_vm4, %v1315_v45, %v2356_v30  ;;  %v2361_v35 = vunpack.i.h.bf16 %v2359_v44  ;;  %v2360_v46 = vunpack.i.l.bf16 %v2359_v44 }
 0x1cc   : > { %v1379_v9 = vpack.c.bf16 %v1347_v47, %v1347_v47  ;;  %v1380_v53 = vpack.c.bf16 %v1348_v32, %v1348_v32  ;;  %v2386_v11 = vunpack.i.h.bf16 %v2384_v41  ;;  %v2385_v28 = vunpack.i.l.bf16 %v2384_v41  ;;  %v3014_v47 = vld [vmem:[%s3250_s5] ss:$0 sm:$0xff] }
 0x1cd   : > { %v1284_v57 = vsel %vm718_vm1, %v2797_v4, %v2361_v35  ;;  %v1283_v58 = vsel %vm718_vm1, %v2795_v1, %v2360_v46 }
 0x1ce   : > { %v1449_v33 = vunpack.c.l.b16 %v1379_v9  ;;  %v1450_v34 = vunpack.c.l.b16 %v1380_v53 }
 0x1d0   : > { %v1471_v43 = vpack.c.b16 %v1450_v34, %v1449_v33 }
 0x1d2   : > { %v2996_v62 = vpop.permute.xlu2 %2398 }
 0x1d4   : > { %2151 = vmatmul.msk.bf16.gmra.mxu2 %vm548_vm0, %v1471_v43 }
 0x1d7   : > { %v2364_v49 = vpop.permute.xlu1 %2363 }
 0x1d8   : > { %v2366_v51 = vunpack.i.h.bf16 %v2364_v49  ;;  %v2365_v56 = vunpack.i.l.bf16 %v2364_v49 }
 0x1da   : > { %v1316_v0 = vsel %vm1293_vm3, %v1283_v58, %v2365_v56  ;;  %v1317_v2 = vsel %vm1293_vm3, %v1284_v57, %v2366_v51  ;;  %v2374_v6 = vpop.permute.xlu0 %2373  ;;  %v2414_v29 = vpop.permute.xlu2 %2413 }
 0x1db   : > { %v1349_v7 = vsel %vm1326_vm4, %v1316_v0, %v2370_v55  ;;  %v1350_v14 = vsel %vm1326_vm4, %v1317_v2, %v2371_v60  ;;  %v2376_v3 = vunpack.i.h.bf16 %v2374_v6  ;;  %v2375_v16 = vunpack.i.l.bf16 %v2374_v6 }
 0x1dc   : > { %v1381_v17 = vpack.c.bf16 %v1349_v7, %v1349_v7  ;;  %v1382_v4 = vpack.c.bf16 %v1350_v14, %v1350_v14  ;;  %v2416_v43 = vunpack.i.h.bf16 %v2414_v29  ;;  %v2415_v44 = vunpack.i.l.bf16 %v2414_v29 }
 0x1dd   : > { %v1286_v23 = vsel %vm718_vm1, %v2831_v63, %v2376_v3  ;;  %v1285_v25 = vsel %vm718_vm1, %v2829_v54, %v2375_v16  ;;  %v2400_v14 = vunpack.i.l.bf16 %v2996_v62 }
 0x1de   : > { %v1451_v20 = vunpack.c.l.b16 %v1381_v17  ;;  %v1452_v1 = vunpack.c.l.b16 %v1382_v4 }
 0x1df   : > { %v2379_v19 = vpop.permute.xlu1 %2378 }
 0x1e0   : > { %v2381_v21 = vunpack.i.h.bf16 %v2379_v19  ;;  %v2380_v22 = vunpack.i.l.bf16 %v2379_v19  ;;  %v1472_v40 = vpack.c.b16 %v1452_v1, %v1451_v20 }
 0x1e2   : > { %v1318_v38 = vsel %vm1293_vm3, %v1285_v25, %v2380_v22  ;;  %v1319_v15 = vsel %vm1293_vm3, %v1286_v23, %v2381_v21  ;;  %v2389_v27 = vpop.permute.xlu0 %2388  ;;  %v3016_v39 = vpop.permute.xlu2 %2428 }
 0x1e3   : > { %v1351_v26 = vsel %vm1326_vm4, %v1318_v38, %v2385_v28  ;;  %v1352_v30 = vsel %vm1326_vm4, %v1319_v15, %v2386_v11  ;;  %v2391_v12 = vunpack.i.h.bf16 %v2389_v27  ;;  %v2390_v45 = vunpack.i.l.bf16 %v2389_v27 }
 0x1e4   : > { %2152 = vmatmul.msk.bf16.gmra.mxu2 %vm548_vm0, %v1472_v40  ;;  %v1383_v24 = vpack.c.bf16 %v1351_v26, %v1351_v26  ;;  %v1384_v59 = vpack.c.bf16 %v1352_v30, %v1352_v30 }
 0x1e5   : > { %v1288_v46 = vsel %vm718_vm1, %v2827_v52, %v2391_v12  ;;  %v1287_v49 = vsel %vm718_vm1, %v2825_v48, %v2390_v45  ;;  %v2401_v48 = vunpack.i.h.bf16 %v2996_v62 }
 0x1e6   : > { %v1453_v9 = vunpack.c.l.b16 %v1383_v24  ;;  %v1454_v53 = vunpack.c.l.b16 %v1384_v59 }
 0x1e7   : > { %v1555_v61 = vpop.f32.mrf.mxu2  ;;  %v2394_v63 = vpop.permute.xlu1 %2393 }
 0x1e8   : > { %v2395_v32 = vunpack.i.l.bf16 %v2394_v63  ;;  %v2396_v33 = vunpack.i.h.bf16 %v2394_v63  ;;  %v1556_v51 = vadd.f32 %v3014_v47, %v1555_v61  ;;  %v1473_v0 = vpack.c.b16 %v1454_v53, %v1453_v9 }
 0x1ea   : > { %v2404_v54 = vpop.permute.xlu0 %2403  ;;  %v1320_v58 = vsel %vm1293_vm3, %v1287_v49, %v2395_v32  ;;  %v1321_v2 = vsel %vm1293_vm3, %v1288_v46, %v2396_v33  ;;  %v1626_v4 = vmax.f32 %v1556_v51, 0.0  ;;  %v2444_v27 = vpop.permute.xlu2 %2443 }
 0x1eb   : > { %v2406_v34 = vunpack.i.h.bf16 %v2404_v54  ;;  %v2405_v41 = vunpack.i.l.bf16 %v2404_v54  ;;  %v1354_v21 = vsel %vm1326_vm4, %v1321_v2, %v2401_v48  ;;  %v2446_v32 = vunpack.i.h.bf16 %v2444_v27 }
 0x1ec   : > { %v1386_v15 = vpack.c.bf16 %v1354_v21, %v1354_v21  ;;  %v2445_v9 = vunpack.i.l.bf16 %v2444_v27  ;;  %v2430_v2 = vunpack.i.l.bf16 %v3016_v39 }
 0x1ed   : > { %v1262_v6 = vsel %vm718_vm1, %v2864_v42, %v2406_v34  ;;  %v1261_v52 = vsel %vm718_vm1, %v2870_v50, %v2405_v41  ;;  %v1353_v50 = vsel %vm1326_vm4, %v1320_v58, %v2400_v14 }
 0x1ee   : > { %v1385_v38 = vpack.c.bf16 %v1353_v50, %v1353_v50  ;;  %v1456_v26 = vunpack.c.l.b16 %v1386_v15 }
 0x1ef   : > { %v1557_v35 = vpop.f32.mrf.mxu2  ;;  %v2409_v57 = vpop.permute.xlu1 %2408 }
 0x1f0   : > { %v1558_v56 = vadd.f32 %v3014_v47, %v1557_v35  ;;  %v2411_v60 = vunpack.i.h.bf16 %v2409_v57  ;;  %v2410_v55 = vunpack.i.l.bf16 %v2409_v57  ;;  %v1455_v29 = vunpack.c.l.b16 %v1385_v38 }
 0x1f2   : > { %v1627_v7 = vmax.f32 %v1558_v56, 0.0  ;;  %v1294_v3 = vsel %vm1293_vm3, %v1261_v52, %v2410_v55  ;;  %v1295_v16 = vsel %vm1293_vm3, %v1262_v6, %v2411_v60  ;;  %v2419_v17 = vpop.permute.xlu0 %2418  ;;  %v1474_v34 = vpack.c.b16 %v1456_v26, %v1455_v29  ;;  %v3051_v57 = vpop.permute.xlu2 %2458 }
 0x1f3   : > { %v1327_v19 = vsel %vm1326_vm4, %v1294_v3, %v2415_v44  ;;  %v1328_v20 = vsel %vm1326_vm4, %v1295_v16, %v2416_v43  ;;  %v2421_v30 = vunpack.i.h.bf16 %v2419_v17  ;;  %v2420_v61 = vunpack.i.l.bf16 %v2419_v17 }
 0x1f4   : > { %2153 = vmatmul.msk.bf16.gmra.mxu2 %vm548_vm0, %v1473_v0  ;;  %v1359_v42 = vpack.c.bf16 %v1327_v19, %v1327_v19  ;;  %v1360_v1 = vpack.c.bf16 %v1328_v20, %v1328_v20  ;;  %v1655_v22 = vpack.c.bf16 %v1627_v7, %v1626_v4  ;;  %v2431_v0 = vunpack.i.h.bf16 %v3016_v39 }
 0x1f5   : > { %v1290_v41 = vsel %vm718_vm1, %v2861_v37, %v2421_v30  ;;  %v1289_v43 = vsel %vm718_vm1, %v2859_v36, %v2420_v61  ;;  %v2460_v38 = vunpack.i.l.bf16 %v3051_v57 }
 0x1f6   : > { %v1429_v62 = vunpack.c.l.b16 %v1359_v42  ;;  %v1430_v23 = vunpack.c.l.b16 %v1360_v1  ;;  %2164 = vmatmul.msk.bf16.vlgmr.msra.gmra.mxu3 %vm548_vm0, %v1655_v22 }
 0x1f7   : > { %v1560_v25 = vpop.f32.mrf.mxu2  ;;  %v2424_v40 = vpop.permute.xlu1 %2423 }
 0x1f8   : > { %v1461_v11 = vpack.c.b16 %v1430_v23, %v1429_v62  ;;  %v1561_v63 = vadd.f32 %v3014_v47, %v1560_v25  ;;  %v2426_v54 = vunpack.i.h.bf16 %v2424_v40  ;;  %v2425_v12 = vunpack.i.l.bf16 %v2424_v40 }
 0x1f9   : > { %v2461_v40 = vunpack.i.h.bf16 %v3051_v57 }
 0x1fa   : > { %v2434_v28 = vpop.permute.xlu0 %2433  ;;  %2141 = vmatmul.msk.bf16.vlgmr.msra.gmra.mxu1 %vm548_vm0, %v1461_v11  ;;  %v1628_v46 = vmax.f32 %v1561_v63, 0.0  ;;  %v1322_v58 = vsel %vm1293_vm3, %v1289_v43, %v2425_v12  ;;  %v1323_v60 = vsel %vm1293_vm3, %v1290_v41, %v2426_v54  ;;  %v2474_v1 = vpop.permute.xlu2 %2473 }
 0x1fb   : > { %v2436_v24 = vunpack.i.h.bf16 %v2434_v28  ;;  %v2435_v59 = vunpack.i.l.bf16 %v2434_v28  ;;  %v1355_v48 = vsel %vm1326_vm4, %v1322_v58, %v2430_v2  ;;  %v1356_v14 = vsel %vm1326_vm4, %v1323_v60, %v2431_v0 }
 0x1fc   : > { %v1387_v39 = vpack.c.bf16 %v1355_v48, %v1355_v48  ;;  %v1388_v19 = vpack.c.bf16 %v1356_v14, %v1356_v14  ;;  %v2476_v28 = vunpack.i.h.bf16 %v2474_v1  ;;  %v2475_v29 = vunpack.i.l.bf16 %v2474_v1 }
 0x1fd   : > { %v1264_v49 = vsel %vm718_vm1, %v2883_v13, %v2436_v24  ;;  %v1263_v51 = vsel %vm718_vm1, %v2886_v18, %v2435_v59 }
 0x1fe   : > { %v1457_v21 = vunpack.c.l.b16 %v1387_v39  ;;  %v1458_v22 = vunpack.c.l.b16 %v1388_v19 }
 0x1ff   : > { %v1562_v45 = vpop.f32.mrf.mxu2  ;;  %v2439_v33 = vpop.permute.xlu1 %2438 }
 0x200   : > { %v1563_v53 = vadd.f32 %v3014_v47, %v1562_v45  ;;  %v2441_v44 = vunpack.i.h.bf16 %v2439_v33  ;;  %v2440_v35 = vunpack.i.l.bf16 %v2439_v33  ;;  %v1475_v54 = vpack.c.b16 %v1458_v22, %v1457_v21 }
 0x202   : > { %v1629_v56 = vmax.f32 %v1563_v53, 0.0  ;;  %v1296_v37 = vsel %vm1293_vm3, %v1263_v51, %v2440_v35  ;;  %v1297_v36 = vsel %vm1293_vm3, %v1264_v49, %v2441_v44  ;;  %v2449_v55 = vpop.permute.xlu0 %2448 }
 0x203   : > { %v1329_v18 = vsel %vm1326_vm4, %v1296_v37, %v2445_v9  ;;  %v1330_v6 = vsel %vm1326_vm4, %v1297_v36, %v2446_v32  ;;  %v2450_v50 = vunpack.i.l.bf16 %v2449_v55  ;;  %v2451_v15 = vunpack.i.h.bf16 %v2449_v55 }
 0x204   : > { %v1656_v13 = vpack.c.bf16 %v1629_v56, %v1628_v46  ;;  %2154 = vmatmul.msk.bf16.gmra.mxu2 %vm548_vm0, %v1474_v34  ;;  %v1361_v52 = vpack.c.bf16 %v1329_v18, %v1329_v18  ;;  %v1362_v7 = vpack.c.bf16 %v1330_v6, %v1330_v6 }
 0x205   : > { %v1291_v63 = vsel %vm718_vm1, %v2902_v31, %v2450_v50  ;;  %v1292_v53 = vsel %vm718_vm1, %v2904_v10, %v2451_v15 }
 0x206   : > { %v1431_v16 = vunpack.c.l.b16 %v1361_v52  ;;  %2165 = vmatmul.msk.bf16.gmra.mxu3 %vm548_vm0, %v1656_v13  ;;  %v1432_v4 = vunpack.c.l.b16 %v1362_v7 }
 0x207   : > { %v1565_v3 = vpop.f32.mrf.mxu2  ;;  %v2454_v17 = vpop.permute.xlu1 %2453 }
 0x208   : > { %v1462_v20 = vpack.c.b16 %v1432_v4, %v1431_v16  ;;  %v1566_v62 = vadd.f32 %v3014_v47, %v1565_v3  ;;  %v2455_v27 = vunpack.i.l.bf16 %v2454_v17  ;;  %v2456_v26 = vunpack.i.h.bf16 %v2454_v17 }
 0x20a   : > { %v2464_v42 = vpop.permute.xlu0 %2463  ;;  %2142 = vmatmul.msk.bf16.gmra.mxu1 %vm548_vm0, %v1462_v20  ;;  %v1630_v12 = vmax.f32 %v1566_v62, 0.0  ;;  %v1324_v33 = vsel %vm1293_vm3, %v1291_v63, %v2455_v27  ;;  %v1325_v41 = vsel %vm1293_vm3, %v1292_v53, %v2456_v26 }
 0x20b   : > { %v2466_v23 = vunpack.i.h.bf16 %v2464_v42  ;;  %v2465_v25 = vunpack.i.l.bf16 %v2464_v42  ;;  %v1357_v46 = vsel %vm1326_vm4, %v1324_v33, %v2460_v38  ;;  %v1358_v10 = vsel %vm1326_vm4, %v1325_v41, %v2461_v40  ;;  %v3111_v33 = vld [vmem:[%s3252_s7] ss:$0 sm:$0xff] }
 0x20c   : > { %v1389_v58 = vpack.c.bf16 %v1357_v46, %v1357_v46  ;;  %v1390_v60 = vpack.c.bf16 %v1358_v10, %v1358_v10 }
 0x20d   : > { %v1266_v45 = vsel %vm718_vm1, %v2918_v5, %v2466_v23  ;;  %v1265_v32 = vsel %vm718_vm1, %v2921_v8, %v2465_v25 }
 0x20e   : > { %v1459_v37 = vunpack.c.l.b16 %v1389_v58  ;;  %v1460_v36 = vunpack.c.l.b16 %v1390_v60 }
 0x20f   : > { %v1567_v11 = vpop.f32.mrf.mxu2  ;;  %v2469_v61 = vpop.permute.xlu1 %2468 }
 0x210   : > { %v1568_v30 = vadd.f32 %v3014_v47, %v1567_v11  ;;  %v2471_v24 = vunpack.i.h.bf16 %v2469_v61  ;;  %v2470_v59 = vunpack.i.l.bf16 %v2469_v61  ;;  %v1476_v6 = vpack.c.b16 %v1460_v36, %v1459_v37 }
 0x212   : > { %v1631_v9 = vmax.f32 %v1568_v30, 0.0  ;;  %v1298_v34 = vsel %vm1293_vm3, %v1265_v32, %v2470_v59  ;;  %v1299_v31 = vsel %vm1293_vm3, %v1266_v45, %v2471_v24 }
 0x213   : > { %v1331_v5 = vsel %vm1326_vm4, %v1298_v34, %v2475_v29  ;;  %v1332_v44 = vsel %vm1326_vm4, %v1299_v31, %v2476_v28 }
 0x214   : > { %v1657_v43 = vpack.c.bf16 %v1631_v9, %v1630_v12  ;;  %2155 = vmatmul.msk.bf16.gmra.mxu2 %vm548_vm0, %v1475_v54  ;;  %v1363_v8 = vpack.c.bf16 %v1331_v5, %v1331_v5  ;;  %v1364_v35 = vpack.c.bf16 %v1332_v44, %v1332_v44 }
 0x216   : > { %v1433_v51 = vunpack.c.l.b16 %v1363_v8  ;;  %v1434_v56 = vunpack.c.l.b16 %v1364_v35  ;;  %2166 = vmatmul.msk.bf16.gmra.mxu3 %vm548_vm0, %v1657_v43 }
 0x217   : > { %v1570_v49 = vpop.f32.mrf.mxu2 }
 0x218   : > { %v1463_v57 = vpack.c.b16 %v1434_v56, %v1433_v51  ;;  %v1571_v55 = vadd.f32 %v3014_v47, %v1570_v49 }
 0x21a   : > { %2143 = vmatmul.msk.bf16.gmra.mxu1 %vm548_vm0, %v1463_v57  ;;  %v1632_v13 = vmax.f32 %v1571_v55, 0.0 }
 0x21f   : > { %v1572_v0 = vpop.f32.mrf.mxu2 }
 0x220   : > { %v1573_v2 = vadd.f32 %v3014_v47, %v1572_v0 }
 0x222   : > { %v1633_v18 = vmax.f32 %v1573_v2, 0.0 }
 0x224   : > { %v1658_v52 = vpack.c.bf16 %v1633_v18, %v1632_v13  ;;  %2156 = vmatmul.msk.bf16.gmra.mxu2 %vm548_vm0, %v1476_v6 }
 0x226   : > { %2167 = vmatmul.msk.bf16.gmra.mxu3 %vm548_vm0, %v1658_v52 }
 0x227   : > { %v1575_v7 = vpop.f32.mrf.mxu2 }
 0x228   : > { %v1576_v48 = vadd.f32 %v3014_v47, %v1575_v7 }
 0x22a   : > { %v1634_v16 = vmax.f32 %v1576_v48, 0.0 }
 0x22f   : > { %v1577_v14 = vpop.f32.mrf.mxu2 }
 0x230   : > { %v1578_v3 = vadd.f32 %v3014_v47, %v1577_v14 }
 0x232   : > { %v1635_v17 = vmax.f32 %v1578_v3, 0.0 }
 0x234   : > { %v1659_v4 = vpack.c.bf16 %v1635_v17, %v1634_v16 }
 0x236   : > { %2168 = vmatmul.msk.bf16.gmra.mxu3 %vm548_vm0, %v1659_v4 }
 0x237   : > { %v1580_v39 = vpop.f32.mrf.mxu2 }
 0x238   : > { %v1581_v19 = vadd.f32 %v3014_v47, %v1580_v39 }
 0x23a   : > { %v1636_v1 = vmax.f32 %v1581_v19, 0.0 }
 0x23f   : > { %v1582_v20 = vpop.f32.mrf.mxu2 }
 0x240   : > { %v1583_v42 = vadd.f32 %v3014_v47, %v1582_v20 }
 0x242   : > { %v1637_v50 = vmax.f32 %v1583_v42, 0.0 }
 0x244   : > { %v1660_v21 = vpack.c.bf16 %v1637_v50, %v1636_v1 }
 0x246   : > { %2169 = vmatmul.msk.bf16.gmra.mxu3 %vm548_vm0, %v1660_v21 }
 0x247   : > { %v1585_v22 = vpop.f32.mrf.mxu2 }
 0x248   : > { %v1586_v62 = vadd.f32 %v3014_v47, %v1585_v22 }
 0x24a   : > { %v1638_v40 = vmax.f32 %v1586_v62, 0.0 }
 0x24f   : > { %v1587_v23 = vpop.f32.mrf.mxu2 }
 0x250   : > { %v1588_v25 = vadd.f32 %v3014_v47, %v1587_v23 }
 0x252   : > { %v1639_v38 = vmax.f32 %v1588_v25, 0.0 }
 0x254   : > { %v1661_v15 = vpack.c.bf16 %v1639_v38, %v1638_v40 }
 0x256   : > { %2170 = vmatmul.msk.bf16.gmra.mxu3 %vm548_vm0, %v1661_v15 }
 0x257   : > { %v1590_v27 = vpop.f32.mrf.mxu2 }
 0x258   : > { %v1591_v11 = vadd.f32 %v3014_v47, %v1590_v27 }
 0x25a   : > { %v1640_v26 = vmax.f32 %v1591_v11, 0.0 }
 0x25f   : > { %v1592_v28 = vpop.f32.mrf.mxu2 }
 0x260   : > { %v1593_v29 = vadd.f32 %v3014_v47, %v1592_v28 }
 0x262   : > { %v1641_v30 = vmax.f32 %v1593_v29, 0.0 }
 0x264   : > { %v1662_v61 = vpack.c.bf16 %v1641_v30, %v1640_v26 }
 0x266   : > { %2171 = vmatmul.msk.bf16.gmra.mxu3 %vm548_vm0, %v1662_v61 }
 0x267   : > { %v1595_v63 = vpop.f32.mrf.mxu2 }
 0x268   : > { %v1596_v24 = vadd.f32 %v3014_v47, %v1595_v63 }
 0x26a   : > { %v1642_v12 = vmax.f32 %v1596_v24, 0.0 }
 0x26f   : > { %v1597_v59 = vpop.f32.mrf.mxu2 }
 0x270   : > { %v1598_v54 = vadd.f32 %v3014_v47, %v1597_v59 }
 0x272   : > { %v1643_v45 = vmax.f32 %v1598_v54, 0.0 }
 0x274   : > { %v1663_v32 = vpack.c.bf16 %v1643_v45, %v1642_v12 }
 0x276   : > { %2172 = vmatmul.msk.bf16.gmra.mxu3 %vm548_vm0, %v1663_v32 }
 0x277   : > { %v1600_v9 = vpop.f32.mrf.mxu2  ;;  %v1540_v53 = vpop.f32.mrf.mxu1 }
 0x278   : > { %v1601_v41 = vadd.f32 %v3014_v47, %v1600_v9  ;;  %v1541_v5 = vadd.f32 %v3014_v47, %v1540_v53 }
 0x279   : > { %v1752_v34 = vpop.f32.mrf.mxu3 }
 0x27a   : > { %v1753_v31 = vadd.f32 %v3111_v33, %v1752_v34  ;;  %v1644_v49 = vmax.f32 %v1601_v41, 0.0  ;;  %v1620_v56 = vmax.f32 %v1541_v5, 0.0 }
 0x27c   : > { %v1823_v43 = vmax.f32 %v1753_v31, 0.0 }
 0x27e   : > { %v1855_v8 = vpack.c.bf16 %v1823_v43, %v1823_v43 }
 0x27f   : > { %v1602_v44 = vpop.f32.mrf.mxu2  ;;  %v1542_v35 = vpop.f32.mrf.mxu1 }
 0x280   : > { %v1603_v46 = vadd.f32 %v3014_v47, %v1602_v44  ;;  %v1543_v10 = vadd.f32 %v3014_v47, %v1542_v35  ;;  %1888 = vst.msk [vmem:[%s3120_s21 + $0x18] sm:$0xf] %vm1881_vm5, %v1855_v8 }
 0x281   : > { %v1754_v58 = vpop.f32.mrf.mxu3 }
 0x282   : > { %v1645_v51 = vmax.f32 %v1603_v46, 0.0  ;;  %v1621_v57 = vmax.f32 %v1543_v10, 0.0  ;;  %v1755_v37 = vadd.f32 %v3111_v33, %v1754_v58 }
 0x284   : > { %v1664_v60 = vpack.c.bf16 %v1645_v51, %v1644_v49  ;;  %v1652_v36 = vpack.c.bf16 %v1621_v57, %v1620_v56  ;;  %v1824_v55 = vmax.f32 %v1755_v37, 0.0 }
 0x286   : > { %2161 = vmatmul.msk.bf16.vlgmr.msrb.gmra.mxu1 %vm548_vm0, %v1652_v36  ;;  %v1856_v2 = vpack.c.bf16 %v1824_v55, %v1824_v55  ;;  %2173 = vmatmul.msk.bf16.gmra.mxu3 %vm548_vm0, %v1664_v60 }
 0x287   : > { %v1605_v0 = vpop.f32.mrf.mxu2  ;;  %v1545_v13 = vpop.f32.mrf.mxu1 }
 0x288   : > { %1889 = vst.msk [vmem:[%s3120_s21 + $0x1c] sm:$0xf] %vm1881_vm5, %v1856_v2  ;;  %v1606_v52 = vadd.f32 %v3014_v47, %v1605_v0  ;;  %v1546_v14 = vadd.f32 %v3014_v47, %v1545_v13 }
 0x289   : > { %v1757_v18 = vpop.f32.mrf.mxu3 }
 0x28a   : > { %v1758_v6 = vadd.f32 %v3111_v33, %v1757_v18  ;;  %v1646_v4 = vmax.f32 %v1606_v52, 0.0  ;;  %v1622_v42 = vmax.f32 %v1546_v14, 0.0 }
 0x28c   : > { %v1825_v7 = vmax.f32 %v1758_v6, 0.0 }
 0x28e   : > { %v1857_v3 = vpack.c.bf16 %v1825_v7, %v1825_v7 }
 0x28f   : > { %v1607_v48 = vpop.f32.mrf.mxu2  ;;  %v1547_v17 = vpop.f32.mrf.mxu1 }
 0x290   : > { %v1608_v16 = vadd.f32 %v3014_v47, %v1607_v48  ;;  %1890 = vst.msk [vmem:[%s3120_s21 + $0x20] sm:$0xf] %vm1881_vm5, %v1857_v3  ;;  %v1548_v39 = vadd.f32 %v3014_v47, %v1547_v17 }
 0x291   : > { %v1759_v20 = vpop.f32.mrf.mxu3 }
 0x292   : > { %v1647_v19 = vmax.f32 %v1608_v16, 0.0  ;;  %v1623_v1 = vmax.f32 %v1548_v39, 0.0  ;;  %v1760_v21 = vadd.f32 %v3111_v33, %v1759_v20 }
 0x294   : > { %v1665_v50 = vpack.c.bf16 %v1647_v19, %v1646_v4  ;;  %v1653_v22 = vpack.c.bf16 %v1623_v1, %v1622_v42  ;;  %v1826_v62 = vmax.f32 %v1760_v21, 0.0 }
 0x296   : > { %v1858_v25 = vpack.c.bf16 %v1826_v62, %v1826_v62  ;;  %2162 = vmatmul.msk.bf16.gmra.mxu1 %vm548_vm0, %v1653_v22  ;;  %2174 = vmatmul.msk.bf16.gmra.mxu3 %vm548_vm0, %v1665_v50 }
 0x297   : > { %v1610_v23 = vpop.f32.mrf.mxu2  ;;  %v1550_v40 = vpop.f32.mrf.mxu1 }
 0x298   : > { %1891 = vst.msk [vmem:[%s3120_s21 + $0x24] sm:$0xf] %vm1881_vm5, %v1858_v25  ;;  %v1611_v27 = vadd.f32 %v3014_v47, %v1610_v23  ;;  %v1551_v29 = vadd.f32 %v3014_v47, %v1550_v40 }
 0x299   : > { %v1762_v38 = vpop.f32.mrf.mxu3 }
 0x29a   : > { %v1763_v15 = vadd.f32 %v3111_v33, %v1762_v38  ;;  %v1648_v63 = vmax.f32 %v1611_v27, 0.0  ;;  %v1624_v12 = vmax.f32 %v1551_v29, 0.0 }
 0x29c   : > { %v1827_v11 = vmax.f32 %v1763_v15, 0.0 }
 0x29e   : > { %v1859_v26 = vpack.c.bf16 %v1827_v11, %v1827_v11 }
 0x29f   : > { %v1612_v28 = vpop.f32.mrf.mxu2  ;;  %v1552_v61 = vpop.f32.mrf.mxu1 }
 0x2a0   : > { %v1613_v30 = vadd.f32 %v3014_v47, %v1612_v28  ;;  %1892 = vst.msk [vmem:[%s3120_s21 + $0x28] sm:$0xf] %vm1881_vm5, %v1859_v26  ;;  %v1553_v24 = vadd.f32 %v3014_v47, %v1552_v61 }
 0x2a1   : > { %v1764_v54 = vpop.f32.mrf.mxu3 }
 0x2a2   : > { %v1649_v59 = vmax.f32 %v1613_v30, 0.0  ;;  %v1625_v45 = vmax.f32 %v1553_v24, 0.0  ;;  %v1765_v9 = vadd.f32 %v3111_v33, %v1764_v54 }
 0x2a4   : > { %v1666_v32 = vpack.c.bf16 %v1649_v59, %v1648_v63  ;;  %v1654_v53 = vpack.c.bf16 %v1625_v45, %v1624_v12  ;;  %v1828_v34 = vmax.f32 %v1765_v9, 0.0 }
 0x2a6   : > { %v1860_v41 = vpack.c.bf16 %v1828_v34, %v1828_v34  ;;  %2163 = vmatmul.msk.bf16.gmra.mxu1 %vm548_vm0, %v1654_v53  ;;  %2175 = vmatmul.msk.bf16.gmra.mxu3 %vm548_vm0, %v1666_v32 }
 0x2a7   : > { %v1615_v31 = vpop.f32.mrf.mxu2 }
 0x2a8   : > { %1893 = vst.msk [vmem:[%s3120_s21 + $0x2c] sm:$0xf] %vm1881_vm5, %v1860_v41  ;;  %v1616_v44 = vadd.f32 %v3014_v47, %v1615_v31 }
 0x2a9   : > { %v1767_v43 = vpop.f32.mrf.mxu3 }
 0x2aa   : > { %v1768_v5 = vadd.f32 %v3111_v33, %v1767_v43  ;;  %v1650_v49 = vmax.f32 %v1616_v44, 0.0 }
 0x2ac   : > { %v1829_v8 = vmax.f32 %v1768_v5, 0.0 }
 0x2ae   : > { %v1861_v46 = vpack.c.bf16 %v1829_v8, %v1829_v8 }
 0x2af   : > { %v1617_v35 = vpop.f32.mrf.mxu2 }
 0x2b0   : > { %v1618_v10 = vadd.f32 %v3014_v47, %v1617_v35  ;;  %1894 = vst.msk [vmem:[%s3120_s21 + $0x30] sm:$0xf] %vm1881_vm5, %v1861_v46 }
 0x2b1   : > { %v1769_v56 = vpop.f32.mrf.mxu3 }
 0x2b2   : > { %v1651_v51 = vmax.f32 %v1618_v10, 0.0  ;;  %v1770_v58 = vadd.f32 %v3111_v33, %v1769_v56 }
 0x2b4   : > { %v1667_v57 = vpack.c.bf16 %v1651_v51, %v1650_v49  ;;  %v1830_v60 = vmax.f32 %v1770_v58, 0.0 }
 0x2b6   : > { %v1862_v37 = vpack.c.bf16 %v1830_v60, %v1830_v60  ;;  %2176 = vmatmul.msk.bf16.gmra.mxu3 %vm548_vm0, %v1667_v57 }
 0x2b8   : > { %1895 = vst.msk [vmem:[%s3120_s21 + $0x34] sm:$0xf] %vm1881_vm5, %v1862_v37 }
 0x2b9   : > { %v1772_v36 = vpop.f32.mrf.mxu3 }
 0x2ba   : > { %v1773_v55 = vadd.f32 %v3111_v33, %v1772_v36 }
 0x2bc   : > { %v1831_v47 = vmax.f32 %v1773_v55, 0.0 }
 0x2be   : > { %v1863_v0 = vpack.c.bf16 %v1831_v47, %v1831_v47 }
 0x2c0   : > { %1896 = vst.msk [vmem:[%s3120_s21 + $0x38] sm:$0xf] %vm1881_vm5, %v1863_v0 }
 0x2c1   : > { %v1774_v2 = vpop.f32.mrf.mxu3 }
 0x2c2   : > { %v1775_v13 = vadd.f32 %v3111_v33, %v1774_v2 }
 0x2c4   : > { %v1832_v18 = vmax.f32 %v1775_v13, 0.0 }
 0x2c6   : > { %v1864_v6 = vpack.c.bf16 %v1832_v18, %v1832_v18 }
 0x2c8   : > { %1897 = vst.msk [vmem:[%s3120_s21 + $0x3c] sm:$0xf] %vm1881_vm5, %v1864_v6 }
 0x2c9   : > { %v1777_v52 = vpop.f32.mrf.mxu3 }
 0x2ca   : > { %v1778_v7 = vadd.f32 %v3111_v33, %v1777_v52 }
 0x2cc   : > { %v1833_v48 = vmax.f32 %v1778_v7, 0.0 }
 0x2ce   : > { %v1865_v14 = vpack.c.bf16 %v1833_v48, %v1833_v48 }
 0x2d0   : > { %1898 = vst.msk [vmem:[%s3120_s21 + $0x40] sm:$0xf] %vm1881_vm5, %v1865_v14 }
 0x2d1   : > { %v1779_v3 = vpop.f32.mrf.mxu3 }
 0x2d2   : > { %v1780_v16 = vadd.f32 %v3111_v33, %v1779_v3 }
 0x2d4   : > { %v1834_v17 = vmax.f32 %v1780_v16, 0.0 }
 0x2d6   : > { %v1866_v4 = vpack.c.bf16 %v1834_v17, %v1834_v17 }
 0x2d8   : > { %1899 = vst.msk [vmem:[%s3120_s21 + $0x44] sm:$0xf] %vm1881_vm5, %v1866_v4 }
 0x2d9   : > { %v1782_v39 = vpop.f32.mrf.mxu3 }
 0x2da   : > { %v1783_v19 = vadd.f32 %v3111_v33, %v1782_v39 }
 0x2dc   : > { %v1835_v20 = vmax.f32 %v1783_v19, 0.0 }
 0x2de   : > { %v1867_v42 = vpack.c.bf16 %v1835_v20, %v1835_v20 }
 0x2e0   : > { %1900 = vst.msk [vmem:[%s3120_s21 + $0x48] sm:$0xf] %vm1881_vm5, %v1867_v42 }
 0x2e1   : > { %v1784_v1 = vpop.f32.mrf.mxu3 }
 0x2e2   : > { %v1785_v50 = vadd.f32 %v3111_v33, %v1784_v1 }
 0x2e4   : > { %v1836_v21 = vmax.f32 %v1785_v50, 0.0 }
 0x2e6   : > { %v1868_v22 = vpack.c.bf16 %v1836_v21, %v1836_v21 }
 0x2e8   : > { %1901 = vst.msk [vmem:[%s3120_s21 + $0x4c] sm:$0xf] %vm1881_vm5, %v1868_v22 }
 0x2e9   : > { %v1787_v62 = vpop.f32.mrf.mxu3 }
 0x2ea   : > { %v1788_v23 = vadd.f32 %v3111_v33, %v1787_v62 }
 0x2ec   : > { %v1837_v25 = vmax.f32 %v1788_v23, 0.0 }
 0x2ee   : > { %v1869_v40 = vpack.c.bf16 %v1837_v25, %v1837_v25 }
 0x2f0   : > { %1902 = vst.msk [vmem:[%s3120_s21 + $0x50] sm:$0xf] %vm1881_vm5, %v1869_v40 }
 0x2f1   : > { %v1789_v38 = vpop.f32.mrf.mxu3 }
 0x2f2   : > { %v1790_v15 = vadd.f32 %v3111_v33, %v1789_v38 }
 0x2f4   : > { %v1838_v27 = vmax.f32 %v1790_v15, 0.0 }
 0x2f6   : > { %v1870_v11 = vpack.c.bf16 %v1838_v27, %v1838_v27 }
 0x2f8   : > { %1903 = vst.msk [vmem:[%s3120_s21 + $0x54] sm:$0xf] %vm1881_vm5, %v1870_v11 }
 0x2f9   : > { %v1792_v28 = vpop.f32.mrf.mxu3 }
 0x2fa   : > { %v1793_v29 = vadd.f32 %v3111_v33, %v1792_v28 }
 0x2fc   : > { %v1839_v26 = vmax.f32 %v1793_v29, 0.0 }
 0x2fe   : > { %v1871_v30 = vpack.c.bf16 %v1839_v26, %v1839_v26 }
 0x300   : > { %1904 = vst.msk [vmem:[%s3120_s21 + $0x58] sm:$0xf] %vm1881_vm5, %v1871_v30 }
 0x301   : > { %v1794_v61 = vpop.f32.mrf.mxu3 }
 0x302   : > { %v1795_v63 = vadd.f32 %v3111_v33, %v1794_v61 }
 0x303   : > { %v1737_v24 = vpop.f32.mrf.mxu1 }
 0x304   : > { %v1738_v59 = vadd.f32 %v3111_v33, %v1737_v24  ;;  %v1840_v54 = vmax.f32 %v1795_v63, 0.0 }
 0x306   : > { %v1817_v12 = vmax.f32 %v1738_v59, 0.0  ;;  %v1872_v45 = vpack.c.bf16 %v1840_v54, %v1840_v54 }
 0x308   : > { %v1849_v32 = vpack.c.bf16 %v1817_v12, %v1817_v12  ;;  %1905 = vst.msk [vmem:[%s3120_s21 + $0x5c] sm:$0xf] %vm1881_vm5, %v1872_v45 }
 0x309   : > { %v1797_v9 = vpop.f32.mrf.mxu3 }
 0x30a   : > { %1882 = vst.msk [vmem:[%s3120_s21] sm:$0xf] %vm1881_vm5, %v1849_v32  ;;  %v1798_v53 = vadd.f32 %v3111_v33, %v1797_v9 }
 0x30b   : > { %v1739_v34 = vpop.f32.mrf.mxu1 }
 0x30c   : > { %v1740_v31 = vadd.f32 %v3111_v33, %v1739_v34  ;;  %v1841_v41 = vmax.f32 %v1798_v53, 0.0 }
 0x30e   : > { %v1818_v43 = vmax.f32 %v1740_v31, 0.0  ;;  %v1873_v5 = vpack.c.bf16 %v1841_v41, %v1841_v41 }
 0x310   : > { %v1850_v44 = vpack.c.bf16 %v1818_v43, %v1818_v43  ;;  %1906 = vst.msk [vmem:[%s3120_s21 + $0x60] sm:$0xf] %vm1881_vm5, %v1873_v5 }
 0x311   : > { %v1799_v8 = vpop.f32.mrf.mxu3 }
 0x312   : > { %1883 = vst.msk [vmem:[%s3120_s21 + $0x4] sm:$0xf] %vm1881_vm5, %v1850_v44  ;;  %v1800_v35 = vadd.f32 %v3111_v33, %v1799_v8 }
 0x313   : > { %v1742_v46 = vpop.f32.mrf.mxu1 }
 0x314   : > { %v1842_v10 = vmax.f32 %v1800_v35, 0.0  ;;  %v1743_v49 = vadd.f32 %v3111_v33, %v1742_v46 }
 0x316   : > { %v1874_v51 = vpack.c.bf16 %v1842_v10, %v1842_v10  ;;  %v1819_v56 = vmax.f32 %v1743_v49, 0.0 }
 0x318   : > { %1907 = vst.msk [vmem:[%s3120_s21 + $0x64] sm:$0xf] %vm1881_vm5, %v1874_v51  ;;  %v1851_v57 = vpack.c.bf16 %v1819_v56, %v1819_v56 }
 0x319   : > { %v1802_v58 = vpop.f32.mrf.mxu3 }
 0x31a   : > { %1884 = vst.msk [vmem:[%s3120_s21 + $0x8] sm:$0xf] %vm1881_vm5, %v1851_v57  ;;  %v1803_v60 = vadd.f32 %v3111_v33, %v1802_v58 }
 0x31b   : > { %v1744_v37 = vpop.f32.mrf.mxu1 }
 0x31c   : > { %v1843_v36 = vmax.f32 %v1803_v60, 0.0  ;;  %v1745_v55 = vadd.f32 %v3111_v33, %v1744_v37 }
 0x31e   : > { %v1875_v47 = vpack.c.bf16 %v1843_v36, %v1843_v36  ;;  %v1820_v0 = vmax.f32 %v1745_v55, 0.0 }
 0x320   : > { %1908 = vst.msk [vmem:[%s3120_s21 + $0x68] sm:$0xf] %vm1881_vm5, %v1875_v47  ;;  %v1852_v2 = vpack.c.bf16 %v1820_v0, %v1820_v0 }
 0x321   : > { %v1804_v13 = vpop.f32.mrf.mxu3 }
 0x322   : > { %1885 = vst.msk [vmem:[%s3120_s21 + $0xc] sm:$0xf] %vm1881_vm5, %v1852_v2  ;;  %v1805_v18 = vadd.f32 %v3111_v33, %v1804_v13 }
 0x323   : > { %v1747_v6 = vpop.f32.mrf.mxu1 }
 0x324   : > { %v1844_v52 = vmax.f32 %v1805_v18, 0.0  ;;  %v1748_v7 = vadd.f32 %v3111_v33, %v1747_v6 }
 0x326   : > { %v1876_v48 = vpack.c.bf16 %v1844_v52, %v1844_v52  ;;  %v1821_v14 = vmax.f32 %v1748_v7, 0.0 }
 0x328   : > { %1909 = vst.msk [vmem:[%s3120_s21 + $0x6c] sm:$0xf] %vm1881_vm5, %v1876_v48  ;;  %v1853_v3 = vpack.c.bf16 %v1821_v14, %v1821_v14 }
 0x329   : > { %v1807_v16 = vpop.f32.mrf.mxu3 }
 0x32a   : > { %1886 = vst.msk [vmem:[%s3120_s21 + $0x10] sm:$0xf] %vm1881_vm5, %v1853_v3  ;;  %v1808_v17 = vadd.f32 %v3111_v33, %v1807_v16 }
 0x32b   : > { %v1749_v4 = vpop.f32.mrf.mxu1 }
 0x32c   : > { %v1845_v39 = vmax.f32 %v1808_v17, 0.0  ;;  %v1750_v19 = vadd.f32 %v3111_v33, %v1749_v4 }
 0x32e   : > { %v1877_v20 = vpack.c.bf16 %v1845_v39, %v1845_v39  ;;  %v1822_v42 = vmax.f32 %v1750_v19, 0.0 }
 0x330   : > { %1910 = vst.msk [vmem:[%s3120_s21 + $0x70] sm:$0xf] %vm1881_vm5, %v1877_v20  ;;  %v1854_v1 = vpack.c.bf16 %v1822_v42, %v1822_v42 }
 0x331   : > { %v1809_v50 = vpop.f32.mrf.mxu3 }
 0x332   : > { %1887 = vst.msk [vmem:[%s3120_s21 + $0x14] sm:$0xf] %vm1881_vm5, %v1854_v1  ;;  %v1810_v21 = vadd.f32 %v3111_v33, %v1809_v50 }
 0x334   : > { %v1846_v22 = vmax.f32 %v1810_v21, 0.0 }
 0x336   : > { %v1878_v62 = vpack.c.bf16 %v1846_v22, %v1846_v22 }
 0x338   : > { %1911 = vst.msk [vmem:[%s3120_s21 + $0x74] sm:$0xf] %vm1881_vm5, %v1878_v62 }
 0x339   : > { %v1812_v23 = vpop.f32.mrf.mxu3 }
 0x33a   : > { %v1813_v25 = vadd.f32 %v3111_v33, %v1812_v23 }
 0x33c   : > { %v1847_v40 = vmax.f32 %v1813_v25, 0.0 }
 0x33e   : > { %v1879_v38 = vpack.c.bf16 %v1847_v40, %v1847_v40 }
 0x340   : > { %1912 = vst.msk [vmem:[%s3120_s21 + $0x78] sm:$0xf] %vm1881_vm5, %v1879_v38 }
 0x341   : > { %v1814_v15 = vpop.f32.mrf.mxu3 }
 0x342   : > { %v1815_v27 = vadd.f32 %v3111_v33, %v1814_v15 }
 0x344   : > { %v1848_v11 = vmax.f32 %v1815_v27, 0.0 }
 0x346   : > { %v1880_v28 = vpack.c.bf16 %v1848_v11, %v1848_v11 }
 0x348   : > { %1913 = vst.msk [vmem:[%s3120_s21 + $0x7c] sm:$0xf] %vm1881_vm5, %v1880_v28 }
 0x349 PF: > { %s18_s29 = sadd.s32 1, %s2503_s29   ;;  %s3254_s27 = smov %s2499_s28 }
 0x34a   : > { %p15_p5 = scmp.ge.s32.totalorder %s18_s29, 4   ;;  %s3255_s28 = smov %s3257_s30 }
 0x34c   :  { %17 = sbr.rel (!%p15_p5) target bundleno = 2 (0x2), region = 91 }

</bundles_post_ra>
